<compile_context>
chip_gen: v5e
topology: v5e:2x2
jax: 0.10.0
libtpu: 0.0.40
codegen_flags: <defaults>
</compile_context>

<pallas_src>
import jax
import jax.numpy as jnp
from jax.experimental import pallas as pl
from jax.experimental.pallas import tpu as pltpu

# Logical (PyTorch) dims and lane-padded dims.
D_IN, H1, H2, H3, NCLASS = 784, 500, 200, 50, 10
D_IN_P, H1_P, H2_P, H3_P = 896, 512, 256, 64


def _round_up(n, m):
    return ((n + m - 1) // m) * m


def mlp1_kernel(x_ref,
                w1_ref, b1_ref,
                w2_ref, b2_ref,
                w3_ref, b3_ref,
                w4_ref, b4_ref,
                out_ref):
    x = x_ref[...]                                   # (TB, 896) bf16

    # fc1 + relu (dropout = identity in eval mode)
    h = jnp.dot(x, w1_ref[...], preferred_element_type=jnp.float32) + b1_ref[...]
    h = jnp.maximum(h, 0.0)

    # fc2 + relu
    h = jnp.dot(h.astype(jnp.bfloat16), w2_ref[...],
                preferred_element_type=jnp.float32) + b2_ref[...]
    h = jnp.maximum(h, 0.0)

    # fc3 + relu
    h = jnp.dot(h.astype(jnp.bfloat16), w3_ref[...],
                preferred_element_type=jnp.float32) + b3_ref[...]
    h = jnp.maximum(h, 0.0)

    # fc4 + relu (the reference applies ReLU to fc4 output before softmax)
    logits = jnp.dot(h.astype(jnp.bfloat16), w4_ref[...],
                     preferred_element_type=jnp.float32) + b4_ref[...]
    logits = jnp.maximum(logits, 0.0)

    # softmax over the class dim, numerically stable
    m = jnp.max(logits, axis=-1, keepdims=True)
    e = jnp.exp(logits - m)
    denom = jnp.sum(e, axis=-1, keepdims=True)
    out_ref[...] = e * pl.reciprocal(denom, approx=True)


def _pad2(a, rows, cols):
    return jnp.pad(a, ((0, rows - a.shape[0]), (0, cols - a.shape[1])))


def mlp1_forward(x, params, *, tb=256):
    """x: (B, 1, 28, 28) or (B, 784) float32.  Returns (B, 10) softmax probs."""
    x2d = x.reshape(-1, D_IN).astype(jnp.float32)
    B = x2d.shape[0]
    (w1, b1), (w2, b2), (w3, b3), (w4, b4) = params

    # Batch tile: sublane-aligned, capped at `tb`; pad B to a multiple of TB.
    TB = min(tb, _round_up(B, 8))
    B_pad = _round_up(B, TB)
    nb = B_pad // TB

    # Zero-pad input rows (batch) and columns (K: 784 -> 896); cast to bf16 for the MXU.
    x_p = _pad2(x2d, B_pad, D_IN_P).astype(jnp.bfloat16)

    # Zero-pad weights to lane-friendly shapes; weights bf16, biases f32.
    w1p = _pad2(w1, D_IN_P, H1_P).astype(jnp.bfloat16)
    b1p = _pad2(b1, 1, H1_P).astype(jnp.float32)
    w2p = _pad2(w2, H1_P, H2_P).astype(jnp.bfloat16)
    b2p = _pad2(b2, 1, H2_P).astype(jnp.float32)
    w3p = _pad2(w3, H2_P, H3_P).astype(jnp.bfloat16)
    b3p = _pad2(b3, 1, H3_P).astype(jnp.float32)
    w4p = _pad2(w4, H3_P, NCLASS).astype(jnp.bfloat16)
    b4p = b4.astype(jnp.float32)                     # (1, 10)

    # Weights/biases: same block every grid step -> stay resident in VMEM.
    resident = lambda shape: pl.BlockSpec(shape, lambda i: (0, 0))

    out = pl.pallas_call(
        mlp1_kernel,
        out_shape=jax.ShapeDtypeStruct((B_pad, NCLASS), jnp.float32),
        grid=(nb,),
        in_specs=[
            pl.BlockSpec((TB, D_IN_P), lambda i: (i, 0)),
            resident((D_IN_P, H1_P)), resident((1, H1_P)),
            resident((H1_P, H2_P)),   resident((1, H2_P)),
            resident((H2_P, H3_P)),   resident((1, H3_P)),
            resident((H3_P, NCLASS)), resident((1, NCLASS)),
        ],
        out_specs=pl.BlockSpec((TB, NCLASS), lambda i: (i, 0)),
        compiler_params=pltpu.CompilerParams(
            dimension_semantics=("parallel",)),
    )(x_p, w1p, b1p, w2p, b2p, w3p, b3p, w4p, b4p)

    return out[:B]


def init_params(key):
    """Deterministic init mimicking nn.Linear's U(-1/sqrt(fan_in), 1/sqrt(fan_in)).
    Weights stored as (in_features, out_features), logical (unpadded) shapes."""
    dims = [(D_IN, H1), (H1, H2), (H2, H3), (H3, NCLASS)]
    params = []
    for (fan_in, fan_out) in dims:
        key, kw, kb = jax.random.split(key, 3)
        bound = 1.0 / (fan_in ** 0.5)
        w = jax.random.uniform(kw, (fan_in, fan_out), jnp.float32, -bound, bound)
        b = jax.random.uniform(kb, (1, fan_out), jnp.float32, -bound, bound)
        params.append((w, b))
    return params


def mlp1_reference(x, params):
    """Pure-JAX f32 reference for correctness checking."""
    h = x.reshape(-1, D_IN).astype(jnp.float32)
    for (w, b) in params:
        h = jnp.maximum(h @ w + b, 0.0)
    return jax.nn.softmax(h, axis=-1)


if __name__ == "__main__":
    key = jax.random.PRNGKey(0)
    k_params, k_x = jax.random.split(key)

    params = init_params(k_params)
    x = jax.random.normal(k_x, (2, 1, 28, 28), jnp.float32)  # NCHW MNIST-like input

    out = mlp1_forward(x, params)
    out = jax.block_until_ready(out)

    # sanity: shape, softmax rows sum to ~1, and close to f32 reference (bf16 matmuls)
    assert out.shape == (2, NCLASS)
    assert jnp.allclose(jnp.sum(out, axis=-1), 1.0, atol=1e-2)
    ref = mlp1_reference(x, params)
    assert jnp.allclose(out, ref, atol=5e-2)

    print("KERNEL_OK")
</pallas_src>

<mosaic_0001>
module attributes {stable_mosaic.version = 11 : i64} {
  func.func @mlp1_kernel(%arg0: i32, %arg1: memref<8x896xbf16, #tpu.memory_space<vmem>>, %arg2: memref<896x512xbf16, #tpu.memory_space<vmem>>, %arg3: memref<1x512xf32, #tpu.memory_space<vmem>>, %arg4: memref<512x256xbf16, #tpu.memory_space<vmem>>, %arg5: memref<1x256xf32, #tpu.memory_space<vmem>>, %arg6: memref<256x64xbf16, #tpu.memory_space<vmem>>, %arg7: memref<1x64xf32, #tpu.memory_space<vmem>>, %arg8: memref<64x10xbf16, #tpu.memory_space<vmem>>, %arg9: memref<1x10xf32, #tpu.memory_space<vmem>>, %arg10: memref<8x10xf32, #tpu.memory_space<vmem>>) attributes {dimension_semantics = [#tpu.dimension_semantics<parallel>], iteration_bounds = array<i64: 1>, scalar_prefetch = 0 : i64, scratch_operands = 0 : i64, tpu.core_type = #tpu.core_type<tc>, window_params = [{transform_indices = @transform_0, window_bounds = array<i64: 8, 896>}, {pipeline_mode = #tpu.pipeline_mode<synchronous>, transform_indices = @transform_1, window_bounds = array<i64: 896, 512>}, {pipeline_mode = #tpu.pipeline_mode<synchronous>, transform_indices = @transform_2, window_bounds = array<i64: 1, 512>}, {pipeline_mode = #tpu.pipeline_mode<synchronous>, transform_indices = @transform_3, window_bounds = array<i64: 512, 256>}, {pipeline_mode = #tpu.pipeline_mode<synchronous>, transform_indices = @transform_4, window_bounds = array<i64: 1, 256>}, {pipeline_mode = #tpu.pipeline_mode<synchronous>, transform_indices = @transform_5, window_bounds = array<i64: 256, 64>}, {pipeline_mode = #tpu.pipeline_mode<synchronous>, transform_indices = @transform_6, window_bounds = array<i64: 1, 64>}, {pipeline_mode = #tpu.pipeline_mode<synchronous>, transform_indices = @transform_7, window_bounds = array<i64: 64, 10>}, {pipeline_mode = #tpu.pipeline_mode<synchronous>, transform_indices = @transform_8, window_bounds = array<i64: 1, 10>}, {transform_indices = @transform_9, window_bounds = array<i64: 8, 10>}]} {
    %c0 = arith.constant 0 : index
    %c0_0 = arith.constant 0 : index
    %0 = vector.load %arg1[%c0, %c0_0] : memref<8x896xbf16, #tpu.memory_space<vmem>>, vector<8x896xbf16>
    %c0_1 = arith.constant 0 : index
    %c0_2 = arith.constant 0 : index
    %1 = vector.load %arg2[%c0_1, %c0_2] : memref<896x512xbf16, #tpu.memory_space<vmem>>, vector<896x512xbf16>
    %cst = arith.constant dense<0.000000e+00> : vector<8x512xf32>
    %2 = tpu.matmul %0, %1, %cst {dimension_numbers = #tpu.dot_dimension_numbers<[1], [0], [0], [1], [0, 0, 1, 1], [], []>} : vector<8x896xbf16>, vector<896x512xbf16>, vector<8x512xf32> -> vector<8x512xf32>
    %c0_3 = arith.constant 0 : index
    %c0_4 = arith.constant 0 : index
    %3 = vector.load %arg3[%c0_3, %c0_4] : memref<1x512xf32, #tpu.memory_space<vmem>>, vector<1x512xf32>
    %4 = vector.broadcast %3 : vector<1x512xf32> to vector<8x512xf32>
    %5 = arith.addf %2, %4 : vector<8x512xf32>
    %cst_5 = arith.constant 0.000000e+00 : f32
    %6 = vector.broadcast %cst_5 : f32 to vector<8x512xf32>
    %7 = arith.maximumf %5, %6 : vector<8x512xf32>
    %8 = arith.truncf %7 : vector<8x512xf32> to vector<8x512xbf16>
    %c0_6 = arith.constant 0 : index
    %c0_7 = arith.constant 0 : index
    %9 = vector.load %arg4[%c0_6, %c0_7] : memref<512x256xbf16, #tpu.memory_space<vmem>>, vector<512x256xbf16>
    %cst_8 = arith.constant dense<0.000000e+00> : vector<8x256xf32>
    %10 = tpu.matmul %8, %9, %cst_8 {dimension_numbers = #tpu.dot_dimension_numbers<[1], [0], [0], [1], [0, 0, 1, 1], [], []>} : vector<8x512xbf16>, vector<512x256xbf16>, vector<8x256xf32> -> vector<8x256xf32>
    %c0_9 = arith.constant 0 : index
    %c0_10 = arith.constant 0 : index
    %11 = vector.load %arg5[%c0_9, %c0_10] : memref<1x256xf32, #tpu.memory_space<vmem>>, vector<1x256xf32>
    %12 = vector.broadcast %11 : vector<1x256xf32> to vector<8x256xf32>
    %13 = arith.addf %10, %12 : vector<8x256xf32>
    %cst_11 = arith.constant 0.000000e+00 : f32
    %14 = vector.broadcast %cst_11 : f32 to vector<8x256xf32>
    %15 = arith.maximumf %13, %14 : vector<8x256xf32>
    %16 = arith.truncf %15 : vector<8x256xf32> to vector<8x256xbf16>
    %c0_12 = arith.constant 0 : index
    %c0_13 = arith.constant 0 : index
    %17 = vector.load %arg6[%c0_12, %c0_13] : memref<256x64xbf16, #tpu.memory_space<vmem>>, vector<256x64xbf16>
    %cst_14 = arith.constant dense<0.000000e+00> : vector<8x64xf32>
    %18 = tpu.matmul %16, %17, %cst_14 {dimension_numbers = #tpu.dot_dimension_numbers<[1], [0], [0], [1], [0, 0, 1, 1], [], []>} : vector<8x256xbf16>, vector<256x64xbf16>, vector<8x64xf32> -> vector<8x64xf32>
    %c0_15 = arith.constant 0 : index
    %c0_16 = arith.constant 0 : index
    %19 = vector.load %arg7[%c0_15, %c0_16] : memref<1x64xf32, #tpu.memory_space<vmem>>, vector<1x64xf32>
    %20 = vector.broadcast %19 : vector<1x64xf32> to vector<8x64xf32>
    %21 = arith.addf %18, %20 : vector<8x64xf32>
    %cst_17 = arith.constant 0.000000e+00 : f32
    %22 = vector.broadcast %cst_17 : f32 to vector<8x64xf32>
    %23 = arith.maximumf %21, %22 : vector<8x64xf32>
    %24 = arith.truncf %23 : vector<8x64xf32> to vector<8x64xbf16>
    %c0_18 = arith.constant 0 : index
    %c0_19 = arith.constant 0 : index
    %25 = vector.load %arg8[%c0_18, %c0_19] : memref<64x10xbf16, #tpu.memory_space<vmem>>, vector<64x10xbf16>
    %cst_20 = arith.constant dense<0.000000e+00> : vector<8x10xf32>
    %26 = tpu.matmul %24, %25, %cst_20 {dimension_numbers = #tpu.dot_dimension_numbers<[1], [0], [0], [1], [0, 0, 1, 1], [], []>} : vector<8x64xbf16>, vector<64x10xbf16>, vector<8x10xf32> -> vector<8x10xf32>
    %c0_21 = arith.constant 0 : index
    %c0_22 = arith.constant 0 : index
    %27 = vector.load %arg9[%c0_21, %c0_22] : memref<1x10xf32, #tpu.memory_space<vmem>>, vector<1x10xf32>
    %28 = vector.broadcast %27 : vector<1x10xf32> to vector<8x10xf32>
    %29 = arith.addf %26, %28 : vector<8x10xf32>
    %cst_23 = arith.constant 0.000000e+00 : f32
    %30 = vector.broadcast %cst_23 : f32 to vector<8x10xf32>
    %31 = arith.maximumf %29, %30 : vector<8x10xf32>
    %cst_24 = arith.constant dense<0xFF800000> : vector<8xf32>
    %32 = vector.multi_reduction <maximumf>, %31, %cst_24 [1] : vector<8x10xf32> to vector<8xf32>
    %33 = vector.shape_cast %32 : vector<8xf32> to vector<8x1xf32>
    %34 = vector.broadcast %33 : vector<8x1xf32> to vector<8x10xf32>
    %35 = arith.subf %31, %34 : vector<8x10xf32>
    %36 = math.exp %35 : vector<8x10xf32>
    %cst_25 = arith.constant dense<0.000000e+00> : vector<8xf32>
    %37 = vector.multi_reduction <add>, %36, %cst_25 [1] : vector<8x10xf32> to vector<8xf32>
    %38 = vector.shape_cast %37 : vector<8xf32> to vector<8x1xf32>
    %39 = tpu.reciprocal %38 {approx = true} : vector<8x1xf32> -> vector<8x1xf32>
    %40 = vector.broadcast %39 : vector<8x1xf32> to vector<8x10xf32>
    %41 = arith.mulf %36, %40 : vector<8x10xf32>
    %c0_26 = arith.constant 0 : index
    %c0_27 = arith.constant 0 : index
    %42 = vector.load %arg10[%c0_26, %c0_27] : memref<8x10xf32, #tpu.memory_space<vmem>>, vector<8x10xf32>
    tpu.vector_store %arg10[%c0_26, %c0_27], %41 {strides = array<i32>} : memref<8x10xf32, #tpu.memory_space<vmem>>, vector<8x10xf32>,
    return
  }
  func.func @transform_0(%arg0: i32) -> (i32, i32) {
    %c0_i32 = arith.constant 0 : i32
    %c0_i32_0 = arith.constant 0 : i32
    return %arg0, %c0_i32 : i32, i32
  }
  func.func @transform_1(%arg0: i32) -> (i32, i32) {
    %c0_i32 = arith.constant 0 : i32
    %c0_i32_0 = arith.constant 0 : i32
    %c0_i32_1 = arith.constant 0 : i32
    return %c0_i32, %c0_i32_0 : i32, i32
  }
  func.func @transform_2(%arg0: i32) -> (i32, i32) {
    %c0_i32 = arith.constant 0 : i32
    %c0_i32_0 = arith.constant 0 : i32
    %c0_i32_1 = arith.constant 0 : i32
    return %c0_i32, %c0_i32_0 : i32, i32
  }
  func.func @transform_3(%arg0: i32) -> (i32, i32) {
    %c0_i32 = arith.constant 0 : i32
    %c0_i32_0 = arith.constant 0 : i32
    %c0_i32_1 = arith.constant 0 : i32
    return %c0_i32, %c0_i32_0 : i32, i32
  }
  func.func @transform_4(%arg0: i32) -> (i32, i32) {
    %c0_i32 = arith.constant 0 : i32
    %c0_i32_0 = arith.constant 0 : i32
    %c0_i32_1 = arith.constant 0 : i32
    return %c0_i32, %c0_i32_0 : i32, i32
  }
  func.func @transform_5(%arg0: i32) -> (i32, i32) {
    %c0_i32 = arith.constant 0 : i32
    %c0_i32_0 = arith.constant 0 : i32
    %c0_i32_1 = arith.constant 0 : i32
    return %c0_i32, %c0_i32_0 : i32, i32
  }
  func.func @transform_6(%arg0: i32) -> (i32, i32) {
    %c0_i32 = arith.constant 0 : i32
    %c0_i32_0 = arith.constant 0 : i32
    %c0_i32_1 = arith.constant 0 : i32
    return %c0_i32, %c0_i32_0 : i32, i32
  }
  func.func @transform_7(%arg0: i32) -> (i32, i32) {
    %c0_i32 = arith.constant 0 : i32
    %c0_i32_0 = arith.constant 0 : i32
    %c0_i32_1 = arith.constant 0 : i32
    return %c0_i32, %c0_i32_0 : i32, i32
  }
  func.func @transform_8(%arg0: i32) -> (i32, i32) {
    %c0_i32 = arith.constant 0 : i32
    %c0_i32_0 = arith.constant 0 : i32
    %c0_i32_1 = arith.constant 0 : i32
    return %c0_i32, %c0_i32_0 : i32, i32
  }
  func.func @transform_9(%arg0: i32) -> (i32, i32) {
    %c0_i32 = arith.constant 0 : i32
    %c0_i32_0 = arith.constant 0 : i32
    return %arg0, %c0_i32 : i32, i32
  }
}

</mosaic_0001>

<bundles_post_ra>
// kernel: tpu_custom_call.1
= control target key start
LH: loop header
LB: loop body
LE: loop exit
PB: predicated region body
PF: predicated region fallthrough
CT: control target
= control target key end

     0   :  { %14 = vsyncpa [#allocation3], 0  ;;  %s4437_s0 = inlined_call_operand.vmem [shape: bf16[8,896], index: 0, kind: input, shape index: {}]   ;;  %s4438_s1 = inlined_call_operand.hbm [shape: bf16[896,512], index: 1, kind: input, shape index: {}]   ;;  %s4439_s2 = inlined_call_operand.vmem [shape: f32[1,512], index: 2, kind: input, shape index: {}]   ;;  %s4440_s3 = inlined_call_operand.hbm [shape: bf16[512,256], index: 3, kind: input, shape index: {}]   ;;  %s4441_s4 = inlined_call_operand.vmem [shape: f32[1,256], index: 4, kind: input, shape index: {}]   ;;  %s4442_s5 = inlined_call_operand.vmem [shape: bf16[256,64], index: 5, kind: input, shape index: {}]   ;;  %s4443_s6 = inlined_call_operand.vmem [shape: f32[1,64], index: 6, kind: input, shape index: {}]   ;;  %s4444_s7 = inlined_call_operand.vmem [shape: bf16[64,10], index: 7, kind: input, shape index: {}]   ;;  %s4445_s8 = inlined_call_operand.vmem [shape: f32[1,10], index: 8, kind: input, shape index: {}]   ;;  %s4446_s9 = inlined_call_operand.hbm [shape: f32[8,10], index: 9, kind: output, shape index: {}]  }
   0x1   :  { %15 = vsyncpa [#allocation6], 0 }
   0x2   :  { %16 = vsyncpa [#allocation4], 0  ;;  %s23_s11 = sshll.u32 %s4438_s1, 4  ;;  %s4196_s12 = smov [#allocation2]   ;;  %s24_s11 = int_to_ptr.hbm [resolvable:$true] %s23_s11 }
   0x3   :  { %s25_s13 = sshll.u32 %s4196_s12, 4  ;;  %s38_s16 = sshll.u32 %s4440_s3, 4  ;;  %s26_s13 = int_to_ptr.vmem [resolvable:$true] %s25_s13  ;;  %s39_s16 = int_to_ptr.hbm [resolvable:$true] %s38_s16 }
   0x4   :  { %s4197_s17 = smov 256   ;;  %s4198_s18 = smov 16  }
   0x5   :  { %31 = dma.hbm_to_vmem [thread:$0]  %s24_s11, 28672, %s26_s13, [#allocation3], %s4197_s17, %s4197_s17, %s4198_s18  }
   0x6   :  { %s4199_s19 = smov [#allocation5]   ;;  %s4200_s21 = smov 128  }
   0x7   :  { %s40_s20 = sshll.u32 %s4199_s19, 4  ;;  %s4201_s22 = smov 8   ;;  %s41_s20 = int_to_ptr.vmem [resolvable:$true] %s40_s20 }
   0x8   :  { %46 = dma.hbm_to_vmem [thread:$0]  %s39_s16, 8192, %s41_s20, [#allocation6], %s4200_s21, %s4200_s21, %s4201_s22  }
   0x9   :  { %4190 = dma.done.wait [#allocation3], 28672  }
   0xa   :  { %4191 = vsyncadd [#allocation3], 4294938624 }
   0xb   :  { %4192 = dma.done.wait [#allocation6], 8192  }
   0xc   :  { %4193 = vsyncadd [#allocation6], 4294959104  ;;  %v2678_v0 = vld [vmem:[#allocation2 + $0xe0] sm:$0xf]  ;;  %v3827_v1 = vld [vmem:[#allocation2 + $0xec] sm:$0xf0] }
   0xd   :  { %v2806_v2 = vld [vmem:[#allocation2 + $0x1e0] sm:$0xf]  ;;  %v2679_v3 = vor.u32 %v3827_v1, %v2678_v0  ;;  %v3859_v4 = vld [vmem:[#allocation2 + $0x1ec] sm:$0xf0]  ;;  %vm2515_vm0 = vcmask 523264   ;;  %vm2533_vm1 = vcmask 80896  }
   0xe   :  { %v2934_v5 = vld [vmem:[#allocation2 + $0x2e0] sm:$0xf]  ;;  %v3891_v6 = vld [vmem:[#allocation2 + $0x2ec] sm:$0xf0]  ;;  %v2807_v7 = vor.u32 %v3859_v4, %v2806_v2  ;;  %s2553_s25 = sshll.u32 %s4446_s9, 4  ;;  %s2554_s25 = int_to_ptr.hbm [resolvable:$true] %s2553_s25 }
   0xf   :  { %v2935_v8 = vor.u32 %v3891_v6, %v2934_v5  ;;  %v3062_v9 = vld [vmem:[#allocation2 + $0x3e0] sm:$0xf]  ;;  %v3923_v10 = vld [vmem:[#allocation2 + $0x3ec] sm:$0xf0]  ;;  %1449 = vmatpush.bf16.msra.mxu0 %v2679_v3 }
  0x10   :  { %v2662_v11 = vld [vmem:[#allocation2 + $0xc0] sm:$0xf]  ;;  %v3063_v12 = vor.u32 %v3923_v10, %v3062_v9  ;;  %v3823_v13 = vld [vmem:[#allocation2 + $0xcc] sm:$0xf0]  ;;  %1462 = vmatpush.bf16.msra.mxu1 %v2807_v7 }
  0x11   :  { %v2790_v14 = vld [vmem:[#allocation2 + $0x1c0] sm:$0xf]  ;;  %v3855_v15 = vld [vmem:[#allocation2 + $0x1cc] sm:$0xf0]  ;;  %1475 = vmatpush.bf16.msra.mxu2 %v2935_v8  ;;  %v2663_v16 = vor.u32 %v3823_v13, %v2662_v11 }
  0x12   :  { %v2791_v17 = vor.u32 %v3855_v15, %v2790_v14  ;;  %v2918_v18 = vld [vmem:[#allocation2 + $0x2c0] sm:$0xf]  ;;  %v3887_v19 = vld [vmem:[#allocation2 + $0x2cc] sm:$0xf0]  ;;  %1488 = vmatpush.bf16.msra.mxu3 %v3063_v12 }
  0x13   :  { %v3046_v20 = vld [vmem:[#allocation2 + $0x3c0] sm:$0xf]  ;;  %v2919_v21 = vor.u32 %v3887_v19, %v2918_v18  ;;  %v3919_v22 = vld [vmem:[#allocation2 + $0x3cc] sm:$0xf0]  ;;  %1450 = vmatpush.bf16.msra.mxu0 %v2663_v16 }
  0x14   :  { %v2646_v23 = vld [vmem:[#allocation2 + $0xa0] sm:$0xf]  ;;  %v3819_v24 = vld [vmem:[#allocation2 + $0xac] sm:$0xf0]  ;;  %v3047_v25 = vor.u32 %v3919_v22, %v3046_v20  ;;  %1463 = vmatpush.bf16.msra.mxu1 %v2791_v17 }
  0x15   :  { %v2774_v26 = vld [vmem:[#allocation2 + $0x1a0] sm:$0xf]  ;;  %v3851_v27 = vld [vmem:[#allocation2 + $0x1ac] sm:$0xf0]  ;;  %v2647_v29 = vor.u32 %v3819_v24, %v2646_v23  ;;  %1476 = vmatpush.bf16.msra.mxu2 %v2919_v21 }
  0x16   :  { %v2902_v28 = vld [vmem:[#allocation2 + $0x2a0] sm:$0xf]  ;;  %v3883_v30 = vld [vmem:[#allocation2 + $0x2ac] sm:$0xf0]  ;;  %v2775_v33 = vor.u32 %v3851_v27, %v2774_v26  ;;  %1489 = vmatpush.bf16.msra.mxu3 %v3047_v25 }
  0x17   :  { %v3030_v31 = vld [vmem:[#allocation2 + $0x3a0] sm:$0xf]  ;;  %v3915_v32 = vld [vmem:[#allocation2 + $0x3ac] sm:$0xf0]  ;;  %v2903_v34 = vor.u32 %v3883_v30, %v2902_v28  ;;  %1451 = vmatpush.bf16.msra.mxu0 %v2647_v29 }
  0x18   :  { %v2630_v35 = vld [vmem:[#allocation2 + $0x80] sm:$0xf]  ;;  %v3815_v36 = vld [vmem:[#allocation2 + $0x8c] sm:$0xf0]  ;;  %v3031_v38 = vor.u32 %v3915_v32, %v3030_v31  ;;  %1464 = vmatpush.bf16.msra.mxu1 %v2775_v33 }
  0x19   :  { %v2758_v37 = vld [vmem:[#allocation2 + $0x180] sm:$0xf]  ;;  %v3847_v39 = vld [vmem:[#allocation2 + $0x18c] sm:$0xf0]  ;;  %v2631_v44 = vor.u32 %v3815_v36, %v2630_v35  ;;  %1477 = vmatpush.bf16.msra.mxu2 %v2903_v34 }
  0x1a   :  { %v2886_v40 = vld [vmem:[#allocation2 + $0x280] sm:$0xf]  ;;  %v3879_v41 = vld [vmem:[#allocation2 + $0x28c] sm:$0xf0]  ;;  %v2759_v45 = vor.u32 %v3847_v39, %v2758_v37  ;;  %1490 = vmatpush.bf16.msra.mxu3 %v3031_v38  ;;  %v3825_v37 = vld [vmem:[#allocation2 + $0xe4] sm:$0xf] }
  0x1b   :  { %v3014_v42 = vld [vmem:[#allocation2 + $0x380] sm:$0xf]  ;;  %v3911_v43 = vld [vmem:[#allocation2 + $0x38c] sm:$0xf0]  ;;  %v2887_v46 = vor.u32 %v3879_v41, %v2886_v40  ;;  %1452 = vmatpush.bf16.msra.mxu0 %v2631_v44  ;;  %v2680_v38 = vld [vmem:[#allocation2 + $0xf0] sm:$0xf0] }
  0x1c   :  { %v2614_v47 = vld [vmem:[#allocation2 + $0x60] sm:$0xf]  ;;  %v3811_v48 = vld [vmem:[#allocation2 + $0x6c] sm:$0xf0]  ;;  %v3015_v50 = vor.u32 %v3911_v43, %v3014_v42  ;;  %1465 = vmatpush.bf16.msra.mxu1 %v2759_v45 }
  0x1d   :  { %v2742_v49 = vld [vmem:[#allocation2 + $0x160] sm:$0xf]  ;;  %v3843_v51 = vld [vmem:[#allocation2 + $0x16c] sm:$0xf0]  ;;  %v2615_v56 = vor.u32 %v3811_v48, %v2614_v47  ;;  %1478 = vmatpush.bf16.msra.mxu2 %v2887_v46  ;;  %v2683_v46 = vor.u32 %v3825_v37, %v2680_v38 }
  0x1e   :  { %v2870_v52 = vld [vmem:[#allocation2 + $0x260] sm:$0xf]  ;;  %v3875_v53 = vld [vmem:[#allocation2 + $0x26c] sm:$0xf0]  ;;  %v2743_v57 = vor.u32 %v3843_v51, %v2742_v49  ;;  %1491 = vmatpush.bf16.msra.mxu3 %v3015_v50  ;;  %v3821_v50 = vld [vmem:[#allocation2 + $0xc4] sm:$0xf] }
  0x1f   :  { %v2998_v54 = vld [vmem:[#allocation2 + $0x360] sm:$0xf]  ;;  %v3907_v55 = vld [vmem:[#allocation2 + $0x36c] sm:$0xf0]  ;;  %v2871_v58 = vor.u32 %v3875_v53, %v2870_v52  ;;  %1453 = vmatpush.bf16.msra.mxu0 %v2615_v56  ;;  %v2664_v51 = vld [vmem:[#allocation2 + $0xd0] sm:$0xf0] }
  0x20   :  { %v2598_v59 = vld [vmem:[#allocation2 + $0x40] sm:$0xf]  ;;  %v3807_v60 = vld [vmem:[#allocation2 + $0x4c] sm:$0xf0]  ;;  %v2999_v62 = vor.u32 %v3907_v55, %v2998_v54  ;;  %1466 = vmatpush.bf16.msra.mxu1 %v2743_v57 }
  0x21   :  { %v2726_v61 = vld [vmem:[#allocation2 + $0x140] sm:$0xf]  ;;  %v3839_v63 = vld [vmem:[#allocation2 + $0x14c] sm:$0xf0]  ;;  %v2599_v4 = vor.u32 %v3807_v60, %v2598_v59  ;;  %1479 = vmatpush.bf16.msra.mxu2 %v2871_v58  ;;  %v2667_v59 = vor.u32 %v3821_v50, %v2664_v51 }
  0x22   :  { %v2854_v0 = vld [vmem:[#allocation2 + $0x240] sm:$0xf]  ;;  %v3871_v1 = vld [vmem:[#allocation2 + $0x24c] sm:$0xf0]  ;;  %v2727_v5 = vor.u32 %v3839_v63, %v2726_v61  ;;  %1492 = vmatpush.bf16.msra.mxu3 %v2999_v62  ;;  %v3817_v62 = vld [vmem:[#allocation2 + $0xa4] sm:$0xf] }
  0x23   :  { %v2982_v2 = vld [vmem:[#allocation2 + $0x340] sm:$0xf]  ;;  %v3903_v3 = vld [vmem:[#allocation2 + $0x34c] sm:$0xf0]  ;;  %v2855_v6 = vor.u32 %v3871_v1, %v2854_v0  ;;  %1454 = vmatpush.bf16.msra.mxu0 %v2599_v4  ;;  %v2648_v63 = vld [vmem:[#allocation2 + $0xb0] sm:$0xf0] }
  0x24   :  { %v2582_v7 = vld [vmem:[#allocation2 + $0x20] sm:$0xf]  ;;  %v3803_v8 = vld [vmem:[#allocation2 + $0x2c] sm:$0xf0]  ;;  %v2983_v10 = vor.u32 %v3903_v3, %v2982_v2  ;;  %1467 = vmatpush.bf16.msra.mxu1 %v2727_v5  ;;  %v67_v2 = vld [vmem:[%s4437_s0 + $0x8] sm:$0xff] }
  0x25   :  { %v2710_v9 = vld [vmem:[#allocation2 + $0x120] sm:$0xf]  ;;  %v3835_v11 = vld [vmem:[#allocation2 + $0x12c] sm:$0xf0]  ;;  %v2583_v16 = vor.u32 %v3803_v8, %v2582_v7  ;;  %1480 = vmatpush.bf16.msra.mxu2 %v2855_v6  ;;  %v310_v8 = vunpack.c.l.b16 %v67_v2 }
  0x26   :  { %v2838_v12 = vld [vmem:[#allocation2 + $0x220] sm:$0xf]  ;;  %v3867_v13 = vld [vmem:[#allocation2 + $0x22c] sm:$0xf0]  ;;  %v2711_v19 = vor.u32 %v3835_v11, %v2710_v9  ;;  %1493 = vmatpush.bf16.msra.mxu3 %v2983_v10  ;;  %v311_v10 = vunpack.c.h.b16 %v67_v2  ;;  %v2651_v11 = vor.u32 %v3817_v62, %v2648_v63 }
  0x27   :  { %v2966_v14 = vld [vmem:[#allocation2 + $0x320] sm:$0xf]  ;;  %v3899_v15 = vld [vmem:[#allocation2 + $0x32c] sm:$0xf0]  ;;  %v2839_v20 = vor.u32 %v3867_v13, %v2838_v12  ;;  %1455 = vmatpush.bf16.msra.mxu0 %v2583_v16  ;;  %v3813_v16 = vld [vmem:[#allocation2 + $0x84] sm:$0xf] }
  0x28   :  { %v2566_v17 = vld [vmem:[#allocation2] sm:$0xf]  ;;  %v3799_v18 = vld [vmem:[#allocation2 + $0xc] sm:$0xf0]  ;;  %v2967_v24 = vor.u32 %v3899_v15, %v2966_v14  ;;  %1468 = vmatpush.bf16.msra.mxu1 %v2711_v19 }
  0x29   :  { %v2694_v21 = vld [vmem:[#allocation2 + $0x100] sm:$0xf]  ;;  %v3831_v22 = vld [vmem:[#allocation2 + $0x10c] sm:$0xf0]  ;;  %v2567_v31 = vor.u32 %v3799_v18, %v2566_v17  ;;  %1481 = vmatpush.bf16.msra.mxu2 %v2839_v20  ;;  %v2632_v17 = vld [vmem:[#allocation2 + $0x90] sm:$0xf0]  ;;  %v4265_v18 = vpack.c.b16 %v310_v8, %v310_v8  ;;  %v4269_v20 = vpack.c.b16 %v311_v10, %v311_v10 }
  0x2a   :  { %v2822_v23 = vld [vmem:[#allocation2 + $0x200] sm:$0xf]  ;;  %v3863_v25 = vld [vmem:[#allocation2 + $0x20c] sm:$0xf0]  ;;  %v2695_v35 = vor.u32 %v3831_v22, %v2694_v21  ;;  %1494 = vmatpush.bf16.msra.mxu3 %v2967_v24  ;;  %v3857_v8 = vld [vmem:[#allocation2 + $0x1e4] sm:$0xf] }
  0x2b   :  { %v2950_v26 = vld [vmem:[#allocation2 + $0x300] sm:$0xf]  ;;  %v3895_v27 = vld [vmem:[#allocation2 + $0x30c] sm:$0xf0]  ;;  %v2823_v36 = vor.u32 %v3863_v25, %v2822_v23  ;;  %1456 = vmatpush.bf16.msra.mxu0 %v2567_v31  ;;  %v3889_v10 = vld [vmem:[#allocation2 + $0x2e4] sm:$0xf] }
  0x2c   :  { %v3190_v28 = vld [vmem:[#allocation2 + $0x4e0] sm:$0xf]  ;;  %v3955_v29 = vld [vmem:[#allocation2 + $0x4ec] sm:$0xf0]  ;;  %v2951_v39 = vor.u32 %v3895_v27, %v2950_v26  ;;  %1469 = vmatpush.bf16.msra.mxu1 %v2695_v35 }
  0x2d   :  { %v3318_v30 = vld [vmem:[#allocation2 + $0x5e0] sm:$0xf]  ;;  %v3987_v32 = vld [vmem:[#allocation2 + $0x5ec] sm:$0xf0]  ;;  %v3191_v40 = vor.u32 %v3955_v29, %v3190_v28  ;;  %1482 = vmatpush.bf16.msra.mxu2 %v2823_v36  ;;  %v2635_v28 = vor.u32 %v3813_v16, %v2632_v17 }
  0x2e   :  { %v3446_v33 = vld [vmem:[#allocation2 + $0x6e0] sm:$0xf]  ;;  %v4019_v34 = vld [vmem:[#allocation2 + $0x6ec] sm:$0xf0]  ;;  %v3319_v41 = vor.u32 %v3987_v32, %v3318_v30  ;;  %1495 = vmatpush.bf16.msra.mxu3 %v2951_v39  ;;  %v3809_v32 = vld [vmem:[#allocation2 + $0x64] sm:$0xf] }
  0x2f   :  { %v3447_v42 = vor.u32 %v4019_v34, %v3446_v33  ;;  %v3174_v43 = vld [vmem:[#allocation2 + $0x4c0] sm:$0xf]  ;;  %v3951_v44 = vld [vmem:[#allocation2 + $0x4cc] sm:$0xf0]  ;;  %1501 = vmatpush.bf16.msrb.mxu0 %v3191_v40  ;;  %v2616_v33 = vld [vmem:[#allocation2 + $0x70] sm:$0xf0] }
  0x30   :  { %v3302_v45 = vld [vmem:[#allocation2 + $0x5c0] sm:$0xf]  ;;  %v3983_v47 = vld [vmem:[#allocation2 + $0x5cc] sm:$0xf0]  ;;  %v3175_v52 = vor.u32 %v3951_v44, %v3174_v43  ;;  %1514 = vmatpush.bf16.msrb.mxu1 %v3319_v41  ;;  %1483 = vmatmul.bf16.vlgmr.msra.gmra.mxu2 %v4265_v18  ;;  %v2619_v40 = vor.u32 %v3809_v32, %v2616_v33  ;;  %v3805_v44 = vld [vmem:[#allocation2 + $0x44] sm:$0xf] }
  0x31   :  { %v3430_v48 = vld [vmem:[#allocation2 + $0x6c0] sm:$0xf]  ;;  %v4015_v49 = vld [vmem:[#allocation2 + $0x6cc] sm:$0xf0]  ;;  %1527 = vmatpush.bf16.msrb.mxu2 %v3447_v42  ;;  %v3303_v54 = vor.u32 %v3983_v47, %v3302_v45  ;;  %1496 = vmatmul.bf16.vlgmr.msra.gmra.mxu3 %v4269_v20  ;;  %v2600_v45 = vld [vmem:[#allocation2 + $0x50] sm:$0xf0] }
  0x32   :  { %v3158_v53 = vld [vmem:[#allocation2 + $0x4a0] sm:$0xf]  ;;  %v3431_v55 = vor.u32 %v4015_v49, %v3430_v48  ;;  %v3947_v56 = vld [vmem:[#allocation2 + $0x4ac] sm:$0xf0]  ;;  %1540 = vmatpush.bf16.msrb.mxu3 %v2683_v46  ;;  %v3885_v32 = vld [vmem:[#allocation2 + $0x2c4] sm:$0xf] }
  0x33   :  { %v3286_v57 = vld [vmem:[#allocation2 + $0x5a0] sm:$0xf]  ;;  %v3979_v58 = vld [vmem:[#allocation2 + $0x5ac] sm:$0xf0]  ;;  %1502 = vmatpush.bf16.msrb.mxu0 %v3175_v52  ;;  %v3159_v0 = vor.u32 %v3947_v56, %v3158_v53  ;;  %v2603_v52 = vor.u32 %v3805_v44, %v2600_v45  ;;  %v3801_v56 = vld [vmem:[#allocation2 + $0x24] sm:$0xf] }
  0x34   :  { %v3414_v60 = vld [vmem:[#allocation2 + $0x6a0] sm:$0xf]  ;;  %v4011_v61 = vld [vmem:[#allocation2 + $0x6ac] sm:$0xf0]  ;;  %v3287_v1 = vor.u32 %v3979_v58, %v3286_v57  ;;  %1515 = vmatpush.bf16.msrb.mxu1 %v3303_v54  ;;  %v2584_v57 = vld [vmem:[#allocation2 + $0x30] sm:$0xf0] }
  0x35   :  { %v66_v3 = vld [vmem:[%s4437_s0] sm:$0xff]  ;;  %1528 = vmatpush.bf16.msrb.mxu2 %v3431_v55  ;;  %v3415_v4 = vor.u32 %v4011_v61, %v3414_v60  ;;  %v3943_v6 = vld [vmem:[#allocation2 + $0x48c] sm:$0xf0] }
  0x36   :  { %v3142_v5 = vld [vmem:[#allocation2 + $0x480] sm:$0xf]  ;;  %v308_v9 = vunpack.c.l.b16 %v66_v3  ;;  %1541 = vmatpush.bf16.msrb.mxu3 %v2667_v59  ;;  %v3975_v12 = vld [vmem:[#allocation2 + $0x58c] sm:$0xf0]  ;;  %v309_v15 = vunpack.c.h.b16 %v66_v3  ;;  %v69_v3 = vld [vmem:[%s4437_s0 + $0x18] sm:$0xf] }
  0x37   :  { %v3270_v7 = vld [vmem:[#allocation2 + $0x580] sm:$0xf]  ;;  %v4007_v14 = vld [vmem:[#allocation2 + $0x68c] sm:$0xf0]  ;;  %1503 = vmatpush.bf16.msrb.mxu0 %v3159_v0  ;;  %v3143_v21 = vor.u32 %v3943_v6, %v3142_v5  ;;  %v3797_v5 = vld [vmem:[#allocation2 + $0x4] sm:$0xf] }
  0x38   :  { %v3398_v13 = vld [vmem:[#allocation2 + $0x680] sm:$0xf]  ;;  %v4267_v19 = vpack.c.b16 %v308_v9, %v308_v9  ;;  %v4271_v22 = vpack.c.b16 %v309_v15, %v309_v15  ;;  %1516 = vmatpush.bf16.msrb.mxu1 %v3287_v1  ;;  %v3271_v23 = vor.u32 %v3975_v12, %v3270_v7  ;;  %v3939_v26 = vld [vmem:[#allocation2 + $0x46c] sm:$0xf0]  ;;  %v2568_v6 = vld [vmem:[#allocation2 + $0x10] sm:$0xf0]  ;;  %v314_v15 = vunpack.c.l.b16 %v69_v3 }
  0x39   :  { %1529 = vmatpush.bf16.msrb.mxu2 %v3415_v4  ;;  %v3399_v24 = vor.u32 %v4007_v14, %v3398_v13  ;;  %v3126_v25 = vld [vmem:[#allocation2 + $0x460] sm:$0xf]  ;;  %v3971_v29 = vld [vmem:[#allocation2 + $0x56c] sm:$0xf0]  ;;  %v2587_v4 = vor.u32 %v3801_v56, %v2584_v57  ;;  %v2808_v9 = vld [vmem:[#allocation2 + $0x1f0] sm:$0xf0] }
  0x3a   :  { %v3254_v27 = vld [vmem:[#allocation2 + $0x560] sm:$0xf]  ;;  %1542 = vmatpush.bf16.msrb.mxu3 %v2651_v11  ;;  %v4003_v31 = vld [vmem:[#allocation2 + $0x66c] sm:$0xf0]  ;;  %1457 = vmatmul.bf16.vlgmr.msra.gmra.mxu0 %v4267_v19  ;;  %v3127_v34 = vor.u32 %v3939_v26, %v3126_v25  ;;  %v2936_v12 = vld [vmem:[#allocation2 + $0x2f0] sm:$0xf0]  ;;  %v2571_v26 = vor.u32 %v3797_v5, %v2568_v6 }
  0x3b   :  { %v3382_v30 = vld [vmem:[#allocation2 + $0x660] sm:$0xf]  ;;  %1504 = vmatpush.bf16.msrb.mxu0 %v3143_v21  ;;  %1470 = vmatmul.bf16.vlgmr.msra.gmra.mxu1 %v4271_v22  ;;  %v3255_v35 = vor.u32 %v3971_v29, %v3254_v27  ;;  %v3935_v38 = vld [vmem:[#allocation2 + $0x44c] sm:$0xf0]  ;;  %v3921_v13 = vld [vmem:[#allocation2 + $0x3e4] sm:$0xf]  ;;  %v2811_v27 = vor.u32 %v3857_v8, %v2808_v9 }
  0x3c   :  { %1517 = vmatpush.bf16.msrb.mxu1 %v3271_v23  ;;  %v3383_v36 = vor.u32 %v4003_v31, %v3382_v30  ;;  %v3110_v37 = vld [vmem:[#allocation2 + $0x440] sm:$0xf]  ;;  %v3967_v41 = vld [vmem:[#allocation2 + $0x54c] sm:$0xf0]  ;;  %v3064_v14 = vld [vmem:[#allocation2 + $0x3f0] sm:$0xf0] }
  0x3d   :  { %1530 = vmatpush.bf16.msrb.mxu2 %v3399_v24  ;;  %v3238_v39 = vld [vmem:[#allocation2 + $0x540] sm:$0xf]  ;;  %v3999_v43 = vld [vmem:[#allocation2 + $0x64c] sm:$0xf0]  ;;  %v3111_v46 = vor.u32 %v3935_v38, %v3110_v37  ;;  %v3953_v21 = vld [vmem:[#allocation2 + $0x4e4] sm:$0xf]  ;;  %v3067_v29 = vor.u32 %v3921_v13, %v3064_v14  ;;  %v4283_v37 = vpack.c.b16 %v314_v15, %v314_v15 }
  0x3e   :  { %1543 = vmatpush.bf16.msrb.mxu3 %v2635_v28  ;;  %v3366_v42 = vld [vmem:[#allocation2 + $0x640] sm:$0xf]  ;;  %v3239_v47 = vor.u32 %v3967_v41, %v3238_v39  ;;  %v3931_v50 = vld [vmem:[#allocation2 + $0x42c] sm:$0xf0]  ;;  %v3192_v23 = vld [vmem:[#allocation2 + $0x4f0] sm:$0xf0]  ;;  %v2939_v28 = vor.u32 %v3889_v10, %v2936_v12 }
  0x3f   :  { %1505 = vmatpush.bf16.msrb.mxu0 %v3127_v34  ;;  %v3367_v48 = vor.u32 %v3999_v43, %v3366_v42  ;;  %v3094_v49 = vld [vmem:[#allocation2 + $0x420] sm:$0xf]  ;;  %v3963_v53 = vld [vmem:[#allocation2 + $0x52c] sm:$0xf0]  ;;  %v3853_v30 = vld [vmem:[#allocation2 + $0x1c4] sm:$0xf]  ;;  %v3195_v33 = vor.u32 %v3953_v21, %v3192_v23 }
  0x40   :  { %1518 = vmatpush.bf16.msrb.mxu1 %v3255_v35  ;;  %v3222_v51 = vld [vmem:[#allocation2 + $0x520] sm:$0xf]  ;;  %v3995_v55 = vld [vmem:[#allocation2 + $0x62c] sm:$0xf0]  ;;  %v3095_v59 = vor.u32 %v3931_v50, %v3094_v49  ;;  %v2792_v31 = vld [vmem:[#allocation2 + $0x1d0] sm:$0xf0] }
  0x41   :  { %1531 = vmatpush.bf16.msrb.mxu2 %v3383_v36  ;;  %v3350_v54 = vld [vmem:[#allocation2 + $0x620] sm:$0xf]  ;;  %v3927_v60 = vld [vmem:[#allocation2 + $0x40c] sm:$0xf0]  ;;  %v3223_v63 = vor.u32 %v3963_v53, %v3222_v51  ;;  %v2920_v34 = vld [vmem:[#allocation2 + $0x2d0] sm:$0xf0]  ;;  %v2795_v42 = vor.u32 %v3853_v30, %v2792_v31 }
  0x42   :  { %1544 = vmatpush.bf16.msrb.mxu3 %v2619_v40  ;;  %v3078_v58 = vld [vmem:[#allocation2 + $0x400] sm:$0xf]  ;;  %v3959_v62 = vld [vmem:[#allocation2 + $0x50c] sm:$0xf0]  ;;  %v3351_v0 = vor.u32 %v3995_v55, %v3350_v54  ;;  %v3917_v35 = vld [vmem:[#allocation2 + $0x3c4] sm:$0xf]  ;;  %v2923_v43 = vor.u32 %v3885_v32, %v2920_v34 }
  0x43   :  { %1506 = vmatpush.bf16.msrb.mxu0 %v3111_v46  ;;  %v3206_v61 = vld [vmem:[#allocation2 + $0x500] sm:$0xf]  ;;  %v3991_v2 = vld [vmem:[#allocation2 + $0x60c] sm:$0xf0]  ;;  %v3079_v11 = vor.u32 %v3927_v60, %v3078_v58  ;;  %v3048_v36 = vld [vmem:[#allocation2 + $0x3d0] sm:$0xf0] }
  0x44   :  { %1519 = vmatpush.bf16.msrb.mxu1 %v3239_v47  ;;  %v3334_v1 = vld [vmem:[#allocation2 + $0x600] sm:$0xf]  ;;  %v68_v7 = vld [vmem:[%s4437_s0 + $0x10] sm:$0xff]  ;;  %v3207_v16 = vor.u32 %v3959_v62, %v3206_v61  ;;  %v3949_v38 = vld [vmem:[#allocation2 + $0x4c4] sm:$0xf]  ;;  %v3051_v44 = vor.u32 %v3917_v35, %v3048_v36 }
  0x45   :  { %1532 = vmatpush.bf16.msrb.mxu2 %v3367_v48  ;;  %v3335_v17 = vor.u32 %v3991_v2, %v3334_v1  ;;  %v312_v24 = vunpack.c.l.b16 %v68_v7  ;;  %v313_v25 = vunpack.c.h.b16 %v68_v7  ;;  %v3176_v39 = vld [vmem:[#allocation2 + $0x4d0] sm:$0xf0]  ;;  %v3849_v45 = vld [vmem:[#allocation2 + $0x1a4] sm:$0xf] }
  0x46   :  { %1545 = vmatpush.bf16.msrb.mxu3 %v2603_v52  ;;  %v2776_v46 = vld [vmem:[#allocation2 + $0x1b0] sm:$0xf0]  ;;  %v3881_v47 = vld [vmem:[#allocation2 + $0x2a4] sm:$0xf]  ;;  %v3179_v48 = vor.u32 %v3949_v38, %v3176_v39 }
  0x47   :  { %1507 = vmatpush.bf16.msrb.mxu0 %v3095_v59  ;;  %v4285_v40 = vpack.c.b16 %v312_v24, %v312_v24  ;;  %v4287_v41 = vpack.c.b16 %v313_v25, %v313_v25  ;;  %v2904_v49 = vld [vmem:[#allocation2 + $0x2b0] sm:$0xf0]  ;;  %v3913_v50 = vld [vmem:[#allocation2 + $0x3a4] sm:$0xf]  ;;  %v2779_v54 = vor.u32 %v3849_v45, %v2776_v46 }
  0x48   :  { %1520 = vmatpush.bf16.msrb.mxu1 %v3223_v63  ;;  %v3032_v51 = vld [vmem:[#allocation2 + $0x3b0] sm:$0xf0]  ;;  %v3945_v52 = vld [vmem:[#allocation2 + $0x4a4] sm:$0xf]  ;;  %v2907_v55 = vor.u32 %v3881_v47, %v2904_v49 }
  0x49   :  { %1533 = vmatpush.bf16.msrb.mxu2 %v3351_v0  ;;  %v3160_v53 = vld [vmem:[#allocation2 + $0x4b0] sm:$0xf0]  ;;  %v3035_v56 = vor.u32 %v3913_v50, %v3032_v51  ;;  %v3845_v57 = vld [vmem:[#allocation2 + $0x184] sm:$0xf] }
  0x4a   :  { %1546 = vmatpush.bf16.msrb.mxu3 %v2587_v4  ;;  %v2760_v58 = vld [vmem:[#allocation2 + $0x190] sm:$0xf0]  ;;  %v3877_v59 = vld [vmem:[#allocation2 + $0x284] sm:$0xf]  ;;  %v3163_v60 = vor.u32 %v3945_v52, %v3160_v53 }
  0x4b   :  { %1508 = vmatpush.bf16.msrb.mxu0 %v3079_v11  ;;  %v2888_v61 = vld [vmem:[#allocation2 + $0x290] sm:$0xf0]  ;;  %v3909_v62 = vld [vmem:[#allocation2 + $0x384] sm:$0xf]  ;;  %v2763_v2 = vor.u32 %v3845_v57, %v2760_v58 }
  0x4c   :  { %1521 = vmatpush.bf16.msrb.mxu1 %v3207_v16  ;;  %v3016_v63 = vld [vmem:[#allocation2 + $0x390] sm:$0xf0]  ;;  %v3941_v0 = vld [vmem:[#allocation2 + $0x484] sm:$0xf]  ;;  %v2891_v3 = vor.u32 %v3877_v59, %v2888_v61 }
  0x4d   :  { %1534 = vmatpush.bf16.msrb.mxu2 %v3335_v17  ;;  %v3144_v1 = vld [vmem:[#allocation2 + $0x490] sm:$0xf0]  ;;  %v3019_v4 = vor.u32 %v3909_v62, %v3016_v63  ;;  %v3841_v5 = vld [vmem:[#allocation2 + $0x164] sm:$0xf]  ;;  %v2686_v62 = vld [vmem:[#allocation2 + $0xe8] sm:$0xf] }
  0x4e   :  { %1547 = vmatpush.bf16.msrb.mxu3 %v2571_v26  ;;  %1509 = vmatmul.bf16.vlgmr.msrb.gmra.mxu0 %v4285_v40  ;;  %v2744_v6 = vld [vmem:[#allocation2 + $0x170] sm:$0xf0]  ;;  %v3873_v7 = vld [vmem:[#allocation2 + $0x264] sm:$0xf]  ;;  %v3147_v8 = vor.u32 %v3941_v0, %v3144_v1  ;;  %v3828_v63 = vld [vmem:[#allocation2 + $0xf4] sm:$0xf0] }
  0x4f   :  { %1553 = vmatpush.bf16.msra.mxu0 %v2811_v27  ;;  %1522 = vmatmul.bf16.vlgmr.msrb.gmra.mxu1 %v4287_v41  ;;  %v2872_v9 = vld [vmem:[#allocation2 + $0x270] sm:$0xf0]  ;;  %v3905_v10 = vld [vmem:[#allocation2 + $0x364] sm:$0xf]  ;;  %v2747_v14 = vor.u32 %v3841_v5, %v2744_v6 }
  0x50   :  { %1566 = vmatpush.bf16.msra.mxu1 %v2939_v28  ;;  %1535 = vmatmul.bf16.vlgmr.msrb.gmra.mxu2 %v4283_v37  ;;  %v3000_v11 = vld [vmem:[#allocation2 + $0x370] sm:$0xf0]  ;;  %v3937_v12 = vld [vmem:[#allocation2 + $0x464] sm:$0xf]  ;;  %v2875_v15 = vor.u32 %v3873_v7, %v2872_v9  ;;  %v2687_v7 = vor.u32 %v3828_v63, %v2686_v62 }
  0x51   :  { %1579 = vmatpush.bf16.msra.mxu2 %v3067_v29  ;;  %1548 = vmatmul.bf16.vlgmr.msrb.gmra.mxu3 %v4267_v19  ;;  %v3128_v13 = vld [vmem:[#allocation2 + $0x470] sm:$0xf0]  ;;  %v3003_v16 = vor.u32 %v3905_v10, %v3000_v11  ;;  %v3837_v17 = vld [vmem:[#allocation2 + $0x144] sm:$0xf] }
  0x52   :  { %1592 = vmatpush.bf16.msra.mxu3 %v3195_v33  ;;  %v2728_v21 = vld [vmem:[#allocation2 + $0x150] sm:$0xf0]  ;;  %v3869_v23 = vld [vmem:[#allocation2 + $0x244] sm:$0xf]  ;;  %v3131_v24 = vor.u32 %v3937_v12, %v3128_v13  ;;  %v2670_v13 = vld [vmem:[#allocation2 + $0xc8] sm:$0xf] }
  0x53   :  { %1554 = vmatpush.bf16.msra.mxu0 %v2795_v42  ;;  %v2856_v25 = vld [vmem:[#allocation2 + $0x250] sm:$0xf0]  ;;  %v3901_v26 = vld [vmem:[#allocation2 + $0x344] sm:$0xf]  ;;  %v2731_v30 = vor.u32 %v3837_v17, %v2728_v21 }
  0x54   :  { %1567 = vmatpush.bf16.msra.mxu1 %v2923_v43  ;;  %v2984_v27 = vld [vmem:[#allocation2 + $0x350] sm:$0xf0]  ;;  %v3933_v28 = vld [vmem:[#allocation2 + $0x444] sm:$0xf]  ;;  %v2859_v31 = vor.u32 %v3869_v23, %v2856_v25 }
  0x55   :  { %1580 = vmatpush.bf16.msra.mxu2 %v3051_v44  ;;  %v3112_v29 = vld [vmem:[#allocation2 + $0x450] sm:$0xf0]  ;;  %v2987_v32 = vor.u32 %v3901_v26, %v2984_v27  ;;  %v3833_v33 = vld [vmem:[#allocation2 + $0x124] sm:$0xf] }
  0x56   :  { %1593 = vmatpush.bf16.msra.mxu3 %v3179_v48  ;;  %v2712_v34 = vld [vmem:[#allocation2 + $0x130] sm:$0xf0]  ;;  %v3865_v35 = vld [vmem:[#allocation2 + $0x224] sm:$0xf]  ;;  %v3115_v36 = vor.u32 %v3933_v28, %v3112_v29  ;;  %v2654_v29 = vld [vmem:[#allocation2 + $0xa8] sm:$0xf] }
  0x57   :  { %1555 = vmatpush.bf16.msra.mxu0 %v2779_v54  ;;  %v2840_v38 = vld [vmem:[#allocation2 + $0x230] sm:$0xf0]  ;;  %v3897_v39 = vld [vmem:[#allocation2 + $0x324] sm:$0xf]  ;;  %v2715_v45 = vor.u32 %v3833_v33, %v2712_v34 }
  0x58   :  { %1568 = vmatpush.bf16.msra.mxu1 %v2907_v55  ;;  %v2968_v42 = vld [vmem:[#allocation2 + $0x330] sm:$0xf0]  ;;  %v3929_v43 = vld [vmem:[#allocation2 + $0x424] sm:$0xf]  ;;  %v2843_v48 = vor.u32 %v3865_v35, %v2840_v38 }
  0x59   :  { %1581 = vmatpush.bf16.msra.mxu2 %v3035_v56  ;;  %v3096_v44 = vld [vmem:[#allocation2 + $0x430] sm:$0xf0]  ;;  %v3829_v46 = vld [vmem:[#allocation2 + $0x104] sm:$0xf]  ;;  %v2971_v49 = vor.u32 %v3897_v39, %v2968_v42 }
  0x5a   :  { %1594 = vmatpush.bf16.msra.mxu3 %v3163_v60  ;;  %v2696_v47 = vld [vmem:[#allocation2 + $0x110] sm:$0xf0]  ;;  %v3861_v50 = vld [vmem:[#allocation2 + $0x204] sm:$0xf]  ;;  %v3099_v53 = vor.u32 %v3929_v43, %v3096_v44  ;;  %v2638_v44 = vld [vmem:[#allocation2 + $0x88] sm:$0xf] }
  0x5b   :  { %1556 = vmatpush.bf16.msra.mxu0 %v2763_v2  ;;  %v2824_v51 = vld [vmem:[#allocation2 + $0x210] sm:$0xf0]  ;;  %v3893_v52 = vld [vmem:[#allocation2 + $0x304] sm:$0xf]  ;;  %v2699_v60 = vor.u32 %v3829_v46, %v2696_v47  ;;  %v2814_v2 = vld [vmem:[#allocation2 + $0x1e8] sm:$0xf] }
  0x5c   :  { %1569 = vmatpush.bf16.msra.mxu1 %v2891_v3  ;;  %v2952_v54 = vld [vmem:[#allocation2 + $0x310] sm:$0xf0]  ;;  %v3925_v55 = vld [vmem:[#allocation2 + $0x404] sm:$0xf]  ;;  %v2827_v0 = vor.u32 %v3861_v50, %v2824_v51  ;;  %v3860_v3 = vld [vmem:[#allocation2 + $0x1f4] sm:$0xf0] }
  0x5d   :  { %1582 = vmatpush.bf16.msra.mxu2 %v3019_v4  ;;  %v3080_v56 = vld [vmem:[#allocation2 + $0x410] sm:$0xf0]  ;;  %v3985_v57 = vld [vmem:[#allocation2 + $0x5e4] sm:$0xf]  ;;  %v2955_v1 = vor.u32 %v3893_v52, %v2952_v54  ;;  %v2815_v11 = vor.u32 %v3860_v3, %v2814_v2  ;;  %v2766_v46 = vld [vmem:[#allocation2 + $0x188] sm:$0xf] }
  0x5e   :  { %1595 = vmatpush.bf16.msra.mxu3 %v3147_v8  ;;  %v3320_v58 = vld [vmem:[#allocation2 + $0x5f0] sm:$0xf0]  ;;  %v4017_v59 = vld [vmem:[#allocation2 + $0x6e4] sm:$0xf]  ;;  %v3083_v4 = vor.u32 %v3925_v55, %v3080_v56  ;;  %v3848_v47 = vld [vmem:[#allocation2 + $0x194] sm:$0xf0] }
  0x5f   :  { %1557 = vmatpush.bf16.msra.mxu0 %v2747_v14  ;;  %v3448_v61 = vld [vmem:[#allocation2 + $0x6f0] sm:$0xf0]  ;;  %v3323_v5 = vor.u32 %v3985_v57, %v3320_v58  ;;  %v3981_v8 = vld [vmem:[#allocation2 + $0x5c4] sm:$0xf]  ;;  %v3824_v14 = vld [vmem:[#allocation2 + $0xd4] sm:$0xf0]  ;;  %v2767_v54 = vor.u32 %v3848_v47, %v2766_v46 }
  0x60   :  { %1570 = vmatpush.bf16.msra.mxu1 %v2875_v15  ;;  %v3451_v6 = vor.u32 %v4017_v59, %v3448_v61  ;;  %v3304_v9 = vld [vmem:[#allocation2 + $0x5d0] sm:$0xf0]  ;;  %v4013_v10 = vld [vmem:[#allocation2 + $0x6c4] sm:$0xf]  ;;  %v2798_v15 = vld [vmem:[#allocation2 + $0x1c8] sm:$0xf]  ;;  %v2671_v23 = vor.u32 %v3824_v14, %v2670_v13 }
  0x61   :  { %1583 = vmatpush.bf16.msra.mxu2 %v3003_v16  ;;  %v3432_v12 = vld [vmem:[#allocation2 + $0x6d0] sm:$0xf0]  ;;  %v3856_v16 = vld [vmem:[#allocation2 + $0x1d4] sm:$0xf0]  ;;  %v3307_v17 = vor.u32 %v3981_v8, %v3304_v9  ;;  %v4009_v26 = vld [vmem:[#allocation2 + $0x6a4] sm:$0xf] }
  0x62   :  { %1596 = vmatpush.bf16.msra.mxu3 %v3131_v24  ;;  %v3435_v21 = vor.u32 %v4013_v10, %v3432_v12  ;;  %v3977_v24 = vld [vmem:[#allocation2 + $0x5a4] sm:$0xf]  ;;  %v3288_v25 = vld [vmem:[#allocation2 + $0x5b0] sm:$0xf0]  ;;  %v2799_v27 = vor.u32 %v3856_v16, %v2798_v15  ;;  %v2622_v56 = vld [vmem:[#allocation2 + $0x68] sm:$0xf] }
  0x63   :  { %1558 = vmatpush.bf16.msra.mxu0 %v2731_v30  ;;  %v3416_v28 = vld [vmem:[#allocation2 + $0x6b0] sm:$0xf0]  ;;  %v3820_v30 = vld [vmem:[#allocation2 + $0xb4] sm:$0xf0]  ;;  %v3291_v33 = vor.u32 %v3977_v24, %v3288_v25  ;;  %v4005_v39 = vld [vmem:[#allocation2 + $0x684] sm:$0xf] }
  0x64   :  { %1571 = vmatpush.bf16.msra.mxu1 %v2859_v31  ;;  %v2782_v31 = vld [vmem:[#allocation2 + $0x1a8] sm:$0xf]  ;;  %v3419_v34 = vor.u32 %v4009_v26, %v3416_v28  ;;  %v2655_v35 = vor.u32 %v3820_v30, %v2654_v29  ;;  %v3272_v38 = vld [vmem:[#allocation2 + $0x590] sm:$0xf0]  ;;  %v3969_v51 = vld [vmem:[#allocation2 + $0x564] sm:$0xf] }
  0x65   :  { %1584 = vmatpush.bf16.msra.mxu2 %v2987_v32  ;;  %v3852_v32 = vld [vmem:[#allocation2 + $0x1b4] sm:$0xf0]  ;;  %v3400_v43 = vld [vmem:[#allocation2 + $0x690] sm:$0xf0]  ;;  %v2750_v58 = vld [vmem:[#allocation2 + $0x168] sm:$0xf] }
  0x66   :  { %1597 = vmatpush.bf16.msra.mxu3 %v3115_v36  ;;  %v3973_v36 = vld [vmem:[#allocation2 + $0x584] sm:$0xf]  ;;  %v2783_v42 = vor.u32 %v3852_v32, %v2782_v31  ;;  %v3256_v52 = vld [vmem:[#allocation2 + $0x570] sm:$0xf0]  ;;  %v3812_v57 = vld [vmem:[#allocation2 + $0x74] sm:$0xf0] }
  0x67   :  { %1559 = vmatpush.bf16.msra.mxu0 %v2715_v45  ;;  %v3816_v45 = vld [vmem:[#allocation2 + $0x94] sm:$0xf0]  ;;  %v3384_v55 = vld [vmem:[#allocation2 + $0x670] sm:$0xf0]  ;;  %v2623_v62 = vor.u32 %v3812_v57, %v2622_v56  ;;  %v3965_v63 = vld [vmem:[#allocation2 + $0x544] sm:$0xf] }
  0x68   :  { %1572 = vmatpush.bf16.msra.mxu1 %v2843_v48  ;;  %v3275_v48 = vor.u32 %v3973_v36, %v3272_v38  ;;  %v2639_v50 = vor.u32 %v3816_v45, %v2638_v44  ;;  %v3844_v59 = vld [vmem:[#allocation2 + $0x174] sm:$0xf0]  ;;  %v3368_v3 = vld [vmem:[#allocation2 + $0x650] sm:$0xf0]  ;;  %v3993_v13 = vld [vmem:[#allocation2 + $0x624] sm:$0xf] }
  0x69   :  { %1585 = vmatpush.bf16.msra.mxu2 %v2971_v49  ;;  %v3403_v49 = vor.u32 %v4005_v39, %v3400_v43  ;;  %v2751_v2 = vor.u32 %v3844_v59, %v2750_v58  ;;  %v3224_v12 = vld [vmem:[#allocation2 + $0x530] sm:$0xf0]  ;;  %v2590_v16 = vld [vmem:[#allocation2 + $0x28] sm:$0xf]  ;;  %v3957_v25 = vld [vmem:[#allocation2 + $0x504] sm:$0xf] }
  0x6a   :  { %1598 = vmatpush.bf16.msra.mxu3 %v3099_v53  ;;  %v4001_v53 = vld [vmem:[#allocation2 + $0x664] sm:$0xf]  ;;  %v3352_v15 = vld [vmem:[#allocation2 + $0x630] sm:$0xf0]  ;;  %v2574_v31 = vld [vmem:[#allocation2 + $0x8] sm:$0xf] }
  0x6b   :  { %1560 = vmatpush.bf16.msra.mxu0 %v2699_v60  ;;  %v3259_v60 = vor.u32 %v3969_v51, %v3256_v52  ;;  %v3387_v61 = vor.u32 %v4001_v53, %v3384_v55  ;;  %v3208_v26 = vld [vmem:[#allocation2 + $0x510] sm:$0xf0]  ;;  %v3989_v29 = vld [vmem:[#allocation2 + $0x604] sm:$0xf]  ;;  %v2942_v36 = vld [vmem:[#allocation2 + $0x2e8] sm:$0xf] }
  0x6c   :  { %1573 = vmatpush.bf16.msra.mxu1 %v2827_v0  ;;  %v3240_v0 = vld [vmem:[#allocation2 + $0x550] sm:$0xf0]  ;;  %v3892_v38 = vld [vmem:[#allocation2 + $0x2f4] sm:$0xf0]  ;;  %v3070_v39 = vld [vmem:[#allocation2 + $0x3e8] sm:$0xf] }
  0x6d   :  { %1586 = vmatpush.bf16.msra.mxu2 %v2955_v1  ;;  %v3997_v1 = vld [vmem:[#allocation2 + $0x644] sm:$0xf]  ;;  %v3243_v8 = vor.u32 %v3965_v63, %v3240_v0  ;;  %v3336_v30 = vld [vmem:[#allocation2 + $0x610] sm:$0xf0]  ;;  %v3924_v43 = vld [vmem:[#allocation2 + $0x3f4] sm:$0xf0]  ;;  %v2943_v51 = vor.u32 %v3892_v38, %v2942_v36 }
  0x6e   :  { %1599 = vmatpush.bf16.msra.mxu3 %v3083_v4  ;;  %1561 = vmatmul.bf16.vlgmr.msra.gmra.mxu0 %v4271_v22  ;;  %v2606_v4 = vld [vmem:[#allocation2 + $0x48] sm:$0xf]  ;;  %v3371_v9 = vor.u32 %v3997_v1, %v3368_v3  ;;  %v3956_v45 = vld [vmem:[#allocation2 + $0x4f4] sm:$0xf0]  ;;  %v3339_v46 = vor.u32 %v3989_v29, %v3336_v30  ;;  %v3071_v52 = vor.u32 %v3924_v43, %v3070_v39 }
  0x6f   :  { %1605 = vmatpush.bf16.msrb.mxu0 %v3323_v5  ;;  %1574 = vmatmul.bf16.vlgmr.msra.gmra.mxu1 %v4265_v18  ;;  %v3808_v5 = vld [vmem:[#allocation2 + $0x54] sm:$0xf0]  ;;  %v3198_v44 = vld [vmem:[#allocation2 + $0x4e8] sm:$0xf] }
  0x70   :  { %1618 = vmatpush.bf16.msrb.mxu1 %v3451_v6  ;;  %1587 = vmatmul.bf16.vlgmr.msra.gmra.mxu2 %v4269_v20  ;;  %v2734_v6 = vld [vmem:[#allocation2 + $0x148] sm:$0xf]  ;;  %v2607_v10 = vor.u32 %v3808_v5, %v2606_v4  ;;  %v3199_v53 = vor.u32 %v3956_v45, %v3198_v44  ;;  %v3888_v55 = vld [vmem:[#allocation2 + $0x2d4] sm:$0xf0] }
  0x71   :  { %1631 = vmatpush.bf16.msrb.mxu2 %v2687_v7  ;;  %1600 = vmatmul.bf16.vlgmr.msra.gmra.mxu3 %v4285_v40  ;;  %v3840_v7 = vld [vmem:[#allocation2 + $0x154] sm:$0xf0]  ;;  %v3054_v56 = vld [vmem:[#allocation2 + $0x3c8] sm:$0xf] }
  0x72   :  { %1644 = vmatpush.bf16.msrb.mxu3 %v2815_v11  ;;  %v3961_v11 = vld [vmem:[#allocation2 + $0x524] sm:$0xf]  ;;  %v2735_v14 = vor.u32 %v3840_v7, %v2734_v6  ;;  %v3920_v58 = vld [vmem:[#allocation2 + $0x3d4] sm:$0xf0]  ;;  %v3182_v59 = vld [vmem:[#allocation2 + $0x4c8] sm:$0xf] }
  0x73   :  { %1606 = vmatpush.bf16.msrb.mxu0 %v3307_v17  ;;  %v3804_v17 = vld [vmem:[#allocation2 + $0x34] sm:$0xf0]  ;;  %v3227_v24 = vor.u32 %v3961_v11, %v3224_v12  ;;  %v3055_v0 = vor.u32 %v3920_v58, %v3054_v56  ;;  %v3038_v4 = vld [vmem:[#allocation2 + $0x3a8] sm:$0xf] }
  0x74   :  { %1619 = vmatpush.bf16.msrb.mxu1 %v3435_v21  ;;  %v2718_v21 = vld [vmem:[#allocation2 + $0x128] sm:$0xf]  ;;  %v2591_v28 = vor.u32 %v3804_v17, %v2590_v16  ;;  %v3884_v3 = vld [vmem:[#allocation2 + $0x2b4] sm:$0xf0] }
  0x75   :  { %1632 = vmatpush.bf16.msrb.mxu2 %v2671_v23  ;;  %v3836_v23 = vld [vmem:[#allocation2 + $0x134] sm:$0xf0]  ;;  %v3166_v7 = vld [vmem:[#allocation2 + $0x4a8] sm:$0xf] }
  0x76   :  { %1645 = vmatpush.bf16.msrb.mxu3 %v2799_v27  ;;  %v3355_v27 = vor.u32 %v3993_v13, %v3352_v15  ;;  %v2719_v32 = vor.u32 %v3836_v23, %v2718_v21  ;;  %v3916_v6 = vld [vmem:[#allocation2 + $0x3b4] sm:$0xf0]  ;;  %v3022_v16 = vld [vmem:[#allocation2 + $0x388] sm:$0xf] }
  0x77   :  { %1607 = vmatpush.bf16.msrb.mxu0 %v3291_v33  ;;  %v3800_v33 = vld [vmem:[#allocation2 + $0x14] sm:$0xf0]  ;;  %v3039_v12 = vor.u32 %v3916_v6, %v3038_v4  ;;  %v3150_v23 = vld [vmem:[#allocation2 + $0x488] sm:$0xf] }
  0x78   :  { %1620 = vmatpush.bf16.msrb.mxu1 %v3419_v34  ;;  %v2702_v34 = vld [vmem:[#allocation2 + $0x108] sm:$0xf]  ;;  %v2575_v47 = vor.u32 %v3800_v33, %v2574_v31  ;;  %v3880_v15 = vld [vmem:[#allocation2 + $0x294] sm:$0xf0] }
  0x79   :  { %1633 = vmatpush.bf16.msrb.mxu2 %v2655_v35  ;;  %v3832_v35 = vld [vmem:[#allocation2 + $0x114] sm:$0xf0]  ;;  %v2878_v30 = vld [vmem:[#allocation2 + $0x268] sm:$0xf] }
  0x7a   :  { %1646 = vmatpush.bf16.msrb.mxu3 %v2783_v42  ;;  %v3211_v42 = vor.u32 %v3957_v25, %v3208_v26  ;;  %v3912_v21 = vld [vmem:[#allocation2 + $0x394] sm:$0xf0]  ;;  %v3278_v25 = vld [vmem:[#allocation2 + $0x588] sm:$0xf] }
  0x7b   :  { %1608 = vmatpush.bf16.msrb.mxu0 %v3275_v48  ;;  %v3326_v48 = vld [vmem:[#allocation2 + $0x5e8] sm:$0xf]  ;;  %v3976_v26 = vld [vmem:[#allocation2 + $0x594] sm:$0xf0] }
  0x7c   :  { %1621 = vmatpush.bf16.msrb.mxu1 %v3403_v49  ;;  %v3988_v49 = vld [vmem:[#allocation2 + $0x5f4] sm:$0xf0]  ;;  %v3279_v33 = vor.u32 %v3976_v26, %v3278_v25  ;;  %v3262_v38 = vld [vmem:[#allocation2 + $0x568] sm:$0xf] }
  0x7d   :  { %1634 = vmatpush.bf16.msrb.mxu2 %v2639_v50  ;;  %v2703_v50 = vor.u32 %v3832_v35, %v2702_v34  ;;  %v3327_v57 = vor.u32 %v3988_v49, %v3326_v48  ;;  %v3876_v31 = vld [vmem:[#allocation2 + $0x274] sm:$0xf0]  ;;  %v3134_v35 = vld [vmem:[#allocation2 + $0x468] sm:$0xf] }
  0x7e   :  { %1647 = vmatpush.bf16.msrb.mxu3 %v2767_v54  ;;  %v2926_v54 = vld [vmem:[#allocation2 + $0x2c8] sm:$0xf]  ;;  %v3908_v34 = vld [vmem:[#allocation2 + $0x374] sm:$0xf0] }
  0x7f   :  { %1609 = vmatpush.bf16.msrb.mxu0 %v3259_v60  ;;  %v3952_v60 = vld [vmem:[#allocation2 + $0x4d4] sm:$0xf0]  ;;  %v2927_v63 = vor.u32 %v3888_v55, %v2926_v54  ;;  %v2862_v45 = vld [vmem:[#allocation2 + $0x248] sm:$0xf] }
  0x80   :  { %1622 = vmatpush.bf16.msrb.mxu1 %v3387_v61  ;;  %v3310_v61 = vld [vmem:[#allocation2 + $0x5c8] sm:$0xf]  ;;  %v3183_v1 = vor.u32 %v3952_v60, %v3182_v59  ;;  %v3940_v36 = vld [vmem:[#allocation2 + $0x474] sm:$0xf0] }
  0x81   :  { %1635 = vmatpush.bf16.msrb.mxu2 %v2623_v62  ;;  %v3984_v62 = vld [vmem:[#allocation2 + $0x5d4] sm:$0xf0]  ;;  %v3135_v44 = vor.u32 %v3940_v36, %v3134_v35  ;;  %v2974_v59 = vld [vmem:[#allocation2 + $0x328] sm:$0xf]  ;;  %v3822_v35 = vld [vmem:[#allocation2 + $0xcc] sm:$0xf] }
  0x82   :  { %1648 = vmatpush.bf16.msrb.mxu3 %v2751_v2  ;;  %v2910_v2 = vld [vmem:[#allocation2 + $0x2a8] sm:$0xf]  ;;  %v3311_v5 = vor.u32 %v3984_v62, %v3310_v61  ;;  %v3972_v39 = vld [vmem:[#allocation2 + $0x574] sm:$0xf0] }
  0x83   :  { %1610 = vmatpush.bf16.msrb.mxu0 %v3243_v8  ;;  %v3948_v8 = vld [vmem:[#allocation2 + $0x4b4] sm:$0xf0]  ;;  %v2911_v11 = vor.u32 %v3884_v3, %v2910_v2  ;;  %v3263_v48 = vor.u32 %v3972_v39, %v3262_v38  ;;  %v3102_v62 = vld [vmem:[#allocation2 + $0x428] sm:$0xf]  ;;  %v2672_v38 = vld [vmem:[#allocation2 + $0xd8] sm:$0xf0] }
  0x84   :  { %1623 = vmatpush.bf16.msrb.mxu1 %v3371_v9  ;;  %v3294_v9 = vld [vmem:[#allocation2 + $0x5a8] sm:$0xf]  ;;  %v3167_v13 = vor.u32 %v3948_v8, %v3166_v7  ;;  %v3904_v49 = vld [vmem:[#allocation2 + $0x354] sm:$0xf0]  ;;  %v3854_v39 = vld [vmem:[#allocation2 + $0x1cc] sm:$0xf] }
  0x85   :  { %1636 = vmatpush.bf16.msrb.mxu2 %v2607_v10  ;;  %v3980_v10 = vld [vmem:[#allocation2 + $0x5b4] sm:$0xf0]  ;;  %v2830_v3 = vld [vmem:[#allocation2 + $0x208] sm:$0xf] }
  0x86   :  { %1649 = vmatpush.bf16.msrb.mxu3 %v2735_v14  ;;  %v2894_v14 = vld [vmem:[#allocation2 + $0x288] sm:$0xf]  ;;  %v3295_v17 = vor.u32 %v3980_v10, %v3294_v9  ;;  %v3868_v58 = vld [vmem:[#allocation2 + $0x234] sm:$0xf0] }
  0x87   :  { %1611 = vmatpush.bf16.msrb.mxu0 %v3227_v24  ;;  %v3944_v24 = vld [vmem:[#allocation2 + $0x494] sm:$0xf0]  ;;  %v2958_v7 = vld [vmem:[#allocation2 + $0x308] sm:$0xf] }
  0x88   :  { %1624 = vmatpush.bf16.msrb.mxu1 %v3355_v27  ;;  %v2895_v27 = vor.u32 %v3880_v15, %v2894_v14  ;;  %v3151_v29 = vor.u32 %v3944_v24, %v3150_v23  ;;  %v3900_v61 = vld [vmem:[#allocation2 + $0x334] sm:$0xf0]  ;;  %v3086_v9 = vld [vmem:[#allocation2 + $0x408] sm:$0xf]  ;;  %v3858_v23 = vld [vmem:[#allocation2 + $0x1ec] sm:$0xf] }
  0x89   :  { %1637 = vmatpush.bf16.msrb.mxu2 %v2591_v28  ;;  %v3023_v28 = vor.u32 %v3912_v21, %v3022_v16  ;;  %v3864_v4 = vld [vmem:[#allocation2 + $0x214] sm:$0xf0]  ;;  %v3454_v14 = vld [vmem:[#allocation2 + $0x6e8] sm:$0xf]  ;;  %v3826_v16 = vld [vmem:[#allocation2 + $0xec] sm:$0xf] }
  0x8a   :  { %1650 = vmatpush.bf16.msrb.mxu3 %v2719_v32  ;;  %v3006_v32 = vld [vmem:[#allocation2 + $0x368] sm:$0xf]  ;;  %v3896_v8 = vld [vmem:[#allocation2 + $0x314] sm:$0xf0]  ;;  %v2688_v21 = vld [vmem:[#allocation2 + $0xf8] sm:$0xf0] }
  0x8b   :  { %1612 = vmatpush.bf16.msrb.mxu0 %v3211_v42  ;;  %v2879_v42 = vor.u32 %v3876_v31, %v2878_v30  ;;  %v3007_v43 = vor.u32 %v3908_v34, %v3006_v32  ;;  %v4020_v15 = vld [vmem:[#allocation2 + $0x6f4] sm:$0xf0]  ;;  %v2816_v24 = vld [vmem:[#allocation2 + $0x1f8] sm:$0xf0]  ;;  %v2959_v25 = vor.u32 %v3896_v8, %v2958_v7  ;;  %v2691_v31 = vor.u32 %v3826_v16, %v2688_v21  ;;  %v3390_v8 = vld [vmem:[#allocation2 + $0x668] sm:$0xf] }
  0x8c   :  { %1625 = vmatpush.bf16.msrb.mxu1 %v3339_v46  ;;  %v3872_v46 = vld [vmem:[#allocation2 + $0x254] sm:$0xf0]  ;;  %v3455_v30 = vor.u32 %v4020_v15, %v3454_v14  ;;  %v2819_v32 = vor.u32 %v3858_v23, %v2816_v24  ;;  %v2752_v14 = vld [vmem:[#allocation2 + $0x178] sm:$0xf0]  ;;  %v3874_v15 = vld [vmem:[#allocation2 + $0x26c] sm:$0xf] }
  0x8d   :  { %1638 = vmatpush.bf16.msrb.mxu2 %v2575_v47  ;;  %v2990_v47 = vld [vmem:[#allocation2 + $0x348] sm:$0xf]  ;;  %v2863_v54 = vor.u32 %v3872_v46, %v2862_v45  ;;  %v4016_v34 = vld [vmem:[#allocation2 + $0x6d4] sm:$0xf0]  ;;  %v2675_v46 = vor.u32 %v3822_v35, %v2672_v38  ;;  %v2880_v16 = vld [vmem:[#allocation2 + $0x278] sm:$0xf0] }
  0x8e   :  { %1651 = vmatpush.bf16.msrb.mxu3 %v2703_v50  ;;  %1613 = vmatmul.bf16.vlgmr.msrb.gmra.mxu0 %v4287_v41  ;;  %v3118_v50 = vld [vmem:[#allocation2 + $0x448] sm:$0xf]  ;;  %v2991_v55 = vor.u32 %v3904_v49, %v2990_v47  ;;  %v4012_v49 = vld [vmem:[#allocation2 + $0x6b4] sm:$0xf0] }
  0x8f   :  { %1657 = vmatpush.bf16.msra.mxu0 %v2943_v51  ;;  %1626 = vmatmul.bf16.vlgmr.msrb.gmra.mxu1 %v4283_v37  ;;  %v3936_v51 = vld [vmem:[#allocation2 + $0x454] sm:$0xf0]  ;;  %v3374_v24 = vld [vmem:[#allocation2 + $0x648] sm:$0xf] }
  0x90   :  { %1670 = vmatpush.bf16.msra.mxu1 %v3071_v52  ;;  %1639 = vmatmul.bf16.vlgmr.msrb.gmra.mxu2 %v4267_v19  ;;  %v3246_v52 = vld [vmem:[#allocation2 + $0x548] sm:$0xf]  ;;  %v3119_v56 = vor.u32 %v3936_v51, %v3118_v50  ;;  %v3818_v50 = vld [vmem:[#allocation2 + $0xac] sm:$0xf] }
  0x91   :  { %1683 = vmatpush.bf16.msra.mxu2 %v3199_v53  ;;  %1652 = vmatmul.bf16.vlgmr.msrb.gmra.mxu3 %v4271_v22  ;;  %v3968_v53 = vld [vmem:[#allocation2 + $0x554] sm:$0xf0]  ;;  %v3358_v38 = vld [vmem:[#allocation2 + $0x628] sm:$0xf] }
  0x92   :  { %1696 = vmatpush.bf16.msra.mxu3 %v3327_v57  ;;  %v2846_v57 = vld [vmem:[#allocation2 + $0x228] sm:$0xf]  ;;  %v3247_v60 = vor.u32 %v3968_v53, %v3246_v52  ;;  %v2656_v52 = vld [vmem:[#allocation2 + $0xb8] sm:$0xf0]  ;;  %v3850_v53 = vld [vmem:[#allocation2 + $0x1ac] sm:$0xf] }
  0x93   :  { %1658 = vmatpush.bf16.msra.mxu0 %v2927_v63  ;;  %v3932_v63 = vld [vmem:[#allocation2 + $0x434] sm:$0xf0]  ;;  %v2847_v2 = vor.u32 %v3868_v58, %v2846_v57  ;;  %v2659_v58 = vor.u32 %v3818_v50, %v2656_v52 }
  0x94   :  { %1671 = vmatpush.bf16.msra.mxu1 %v3055_v0  ;;  %v3230_v0 = vld [vmem:[#allocation2 + $0x528] sm:$0xf]  ;;  %v3103_v6 = vor.u32 %v3932_v63, %v3102_v62  ;;  %v3814_v62 = vld [vmem:[#allocation2 + $0x8c] sm:$0xf]  ;;  %v3992_v52 = vld [vmem:[#allocation2 + $0x614] sm:$0xf0] }
  0x95   :  { %1684 = vmatpush.bf16.msra.mxu2 %v3183_v1  ;;  %v3964_v1 = vld [vmem:[#allocation2 + $0x534] sm:$0xf0] }
  0x96   :  { %1697 = vmatpush.bf16.msra.mxu3 %v3311_v5  ;;  %v2975_v5 = vor.u32 %v3900_v61, %v2974_v59  ;;  %v3231_v10 = vor.u32 %v3964_v1, %v3230_v0  ;;  %v4008_v61 = vld [vmem:[#allocation2 + $0x694] sm:$0xf0]  ;;  %v2640_v0 = vld [vmem:[#allocation2 + $0x98] sm:$0xf0]  ;;  %v3846_v1 = vld [vmem:[#allocation2 + $0x18c] sm:$0xf] }
  0x97   :  { %1659 = vmatpush.bf16.msra.mxu0 %v2911_v11  ;;  %v3928_v11 = vld [vmem:[#allocation2 + $0x414] sm:$0xf0] }
  0x98   :  { %1672 = vmatpush.bf16.msra.mxu1 %v3039_v12  ;;  %v3214_v12 = vld [vmem:[#allocation2 + $0x508] sm:$0xf]  ;;  %v3087_v26 = vor.u32 %v3928_v11, %v3086_v9  ;;  %v4004_v9 = vld [vmem:[#allocation2 + $0x674] sm:$0xf0] }
  0x99   :  { %1685 = vmatpush.bf16.msra.mxu2 %v3167_v13  ;;  %v3960_v13 = vld [vmem:[#allocation2 + $0x514] sm:$0xf0] }
  0x9a   :  { %1698 = vmatpush.bf16.msra.mxu3 %v3295_v17  ;;  %v2831_v17 = vor.u32 %v3864_v4, %v2830_v3  ;;  %v3878_v3 = vld [vmem:[#allocation2 + $0x28c] sm:$0xf]  ;;  %v2896_v4 = vld [vmem:[#allocation2 + $0x298] sm:$0xf0] }
  0x9b   :  { %1660 = vmatpush.bf16.msra.mxu0 %v2895_v27  ;;  %v3890_v27 = vld [vmem:[#allocation2 + $0x2ec] sm:$0xf]  ;;  %v2899_v11 = vor.u32 %v3878_v3, %v2896_v4  ;;  %v3200_v4 = vld [vmem:[#allocation2 + $0x4f8] sm:$0xf0] }
  0x9c   :  { %1673 = vmatpush.bf16.msra.mxu1 %v3023_v28  ;;  %v2944_v28 = vld [vmem:[#allocation2 + $0x2f8] sm:$0xf0] }
  0x9d   :  { %1686 = vmatpush.bf16.msra.mxu2 %v3151_v29  ;;  %v3215_v29 = vor.u32 %v3960_v13, %v3214_v12  ;;  %v2947_v36 = vor.u32 %v3890_v27, %v2944_v28  ;;  %v2624_v12 = vld [vmem:[#allocation2 + $0x78] sm:$0xf0]  ;;  %v3842_v13 = vld [vmem:[#allocation2 + $0x16c] sm:$0xf]  ;;  %v2883_v27 = vor.u32 %v3874_v15, %v2880_v16 }
  0x9e   :  { %1699 = vmatpush.bf16.msra.mxu3 %v3279_v33  ;;  %v3438_v33 = vld [vmem:[#allocation2 + $0x6c8] sm:$0xf]  ;;  %v2755_v23 = vor.u32 %v3842_v13, %v2752_v14  ;;  %v2608_v28 = vld [vmem:[#allocation2 + $0x58] sm:$0xf0] }
  0x9f   :  { %1661 = vmatpush.bf16.msra.mxu0 %v2879_v42  ;;  %v2800_v42 = vld [vmem:[#allocation2 + $0x1d8] sm:$0xf0]  ;;  %v3439_v45 = vor.u32 %v4016_v34, %v3438_v33 }
  0xa0   :  { %1674 = vmatpush.bf16.msra.mxu1 %v3007_v43  ;;  %v3886_v43 = vld [vmem:[#allocation2 + $0x2cc] sm:$0xf]  ;;  %v2803_v47 = vor.u32 %v3854_v39, %v2800_v42  ;;  %v3996_v39 = vld [vmem:[#allocation2 + $0x634] sm:$0xf0] }
  0xa1   :  { %1687 = vmatpush.bf16.msra.mxu2 %v3135_v44  ;;  %v2928_v44 = vld [vmem:[#allocation2 + $0x2d8] sm:$0xf0]  ;;  %v3802_v42 = vld [vmem:[#allocation2 + $0x2c] sm:$0xf]  ;;  %v3359_v50 = vor.u32 %v3996_v39, %v3358_v38 }
  0xa2   :  { %1700 = vmatpush.bf16.msra.mxu3 %v3263_v48  ;;  %v3422_v48 = vld [vmem:[#allocation2 + $0x6a8] sm:$0xf]  ;;  %v2931_v51 = vor.u32 %v3886_v43, %v2928_v44  ;;  %v3040_v38 = vld [vmem:[#allocation2 + $0x3b8] sm:$0xf0]  ;;  %v3946_v39 = vld [vmem:[#allocation2 + $0x4ac] sm:$0xf] }
  0xa3   :  { %1662 = vmatpush.bf16.msra.mxu0 %v2863_v54  ;;  %v2784_v54 = vld [vmem:[#allocation2 + $0x1b8] sm:$0xf0]  ;;  %v3423_v57 = vor.u32 %v4012_v49, %v3422_v48  ;;  %v3866_v48 = vld [vmem:[#allocation2 + $0x22c] sm:$0xf] }
  0xa4   :  { %1675 = vmatpush.bf16.msra.mxu1 %v2991_v55  ;;  %v3882_v55 = vld [vmem:[#allocation2 + $0x2ac] sm:$0xf]  ;;  %v2787_v59 = vor.u32 %v3850_v53, %v2784_v54  ;;  %v2848_v49 = vld [vmem:[#allocation2 + $0x238] sm:$0xf0] }
  0xa5   :  { %1688 = vmatpush.bf16.msra.mxu2 %v3119_v56  ;;  %v2912_v56 = vld [vmem:[#allocation2 + $0x2b8] sm:$0xf0] }
  0xa6   :  { %1701 = vmatpush.bf16.msra.mxu3 %v3247_v60  ;;  %v3406_v60 = vld [vmem:[#allocation2 + $0x688] sm:$0xf]  ;;  %v2915_v63 = vor.u32 %v3882_v55, %v2912_v56  ;;  %v3798_v55 = vld [vmem:[#allocation2 + $0xc] sm:$0xf]  ;;  %v2576_v56 = vld [vmem:[#allocation2 + $0x18] sm:$0xf0] }
  0xa7   :  { %1663 = vmatpush.bf16.msra.mxu0 %v2847_v2  ;;  %v2768_v2 = vld [vmem:[#allocation2 + $0x198] sm:$0xf0] }
  0xa8   :  { %1676 = vmatpush.bf16.msra.mxu1 %v2975_v5  ;;  %v3407_v5 = vor.u32 %v4008_v61, %v3406_v60  ;;  %v2771_v7 = vor.u32 %v3846_v1, %v2768_v2  ;;  %v2704_v60 = vld [vmem:[#allocation2 + $0x118] sm:$0xf0]  ;;  %v3862_v61 = vld [vmem:[#allocation2 + $0x20c] sm:$0xf] }
  0xa9   :  { %1689 = vmatpush.bf16.msra.mxu2 %v3103_v6  ;;  %v2643_v6 = vor.u32 %v3814_v62, %v2640_v0  ;;  %v2832_v62 = vld [vmem:[#allocation2 + $0x218] sm:$0xf0]  ;;  %v3922_v0 = vld [vmem:[#allocation2 + $0x3ec] sm:$0xf] }
  0xaa   :  { %1702 = vmatpush.bf16.msra.mxu3 %v3231_v10  ;;  %v3810_v10 = vld [vmem:[#allocation2 + $0x6c] sm:$0xf]  ;;  %v3072_v1 = vld [vmem:[#allocation2 + $0x3f8] sm:$0xf0]  ;;  %v2835_v13 = vor.u32 %v3862_v61, %v2832_v62 }
  0xab   :  { %1664 = vmatpush.bf16.msra.mxu0 %v2831_v17  ;;  %v3391_v17 = vor.u32 %v4004_v9, %v3390_v8  ;;  %v2627_v21 = vor.u32 %v3810_v10, %v2624_v12  ;;  %v3954_v2 = vld [vmem:[#allocation2 + $0x4ec] sm:$0xf]  ;;  %v2579_v8 = vor.u32 %v3798_v55, %v2576_v56  ;;  %v3075_v14 = vor.u32 %v3922_v0, %v3072_v1  ;;  %v3152_v56 = vld [vmem:[#allocation2 + $0x498] sm:$0xf0] }
  0xac   :  { %1677 = vmatpush.bf16.msra.mxu1 %v2959_v25  ;;  %v4000_v25 = vld [vmem:[#allocation2 + $0x654] sm:$0xf0]  ;;  %v4018_v10 = vld [vmem:[#allocation2 + $0x6ec] sm:$0xf]  ;;  %v3203_v15 = vor.u32 %v3954_v2, %v3200_v4  ;;  %v3008_v2 = vld [vmem:[#allocation2 + $0x378] sm:$0xf0] }
  0xad   :  { %1690 = vmatpush.bf16.msra.mxu2 %v3087_v26  ;;  %v3806_v26 = vld [vmem:[#allocation2 + $0x4c] sm:$0xf]  ;;  %v3375_v33 = vor.u32 %v4000_v25, %v3374_v24  ;;  %v3184_v25 = vld [vmem:[#allocation2 + $0x4d8] sm:$0xf0] }
  0xae   :  { %1703 = vmatpush.bf16.msra.mxu3 %v3215_v29  ;;  %1665 = vmatmul.bf16.vlgmr.msra.gmra.mxu0 %v4265_v18  ;;  %v3838_v29 = vld [vmem:[#allocation2 + $0x14c] sm:$0xf]  ;;  %v2611_v35 = vor.u32 %v3806_v26, %v2608_v28 }
  0xaf   :  { %1709 = vmatpush.bf16.msrb.mxu0 %v3455_v30  ;;  %1678 = vmatmul.bf16.vlgmr.msra.gmra.mxu1 %v4269_v20  ;;  %v2736_v30 = vld [vmem:[#allocation2 + $0x158] sm:$0xf0]  ;;  %v3982_v26 = vld [vmem:[#allocation2 + $0x5cc] sm:$0xf] }
  0xb0   :  { %1722 = vmatpush.bf16.msrb.mxu1 %v2691_v31  ;;  %1691 = vmatmul.bf16.vlgmr.msra.gmra.mxu2 %v4285_v40  ;;  %v3870_v31 = vld [vmem:[#allocation2 + $0x24c] sm:$0xf] }
  0xb1   :  { %1735 = vmatpush.bf16.msrb.mxu2 %v2819_v32  ;;  %1704 = vmatmul.bf16.vlgmr.msra.gmra.mxu3 %v4287_v41  ;;  %v2864_v32 = vld [vmem:[#allocation2 + $0x258] sm:$0xf0]  ;;  %v4014_v28 = vld [vmem:[#allocation2 + $0x6cc] sm:$0xf] }
  0xb2   :  { %1748 = vmatpush.bf16.msrb.mxu3 %v2947_v36  ;;  %v2739_v36 = vor.u32 %v3838_v29, %v2736_v30  ;;  %v2867_v44 = vor.u32 %v3870_v31, %v2864_v32  ;;  %v3440_v29 = vld [vmem:[#allocation2 + $0x6d8] sm:$0xf0]  ;;  %v3906_v1 = vld [vmem:[#allocation2 + $0x36c] sm:$0xf] }
  0xb3   :  { %1710 = vmatpush.bf16.msrb.mxu0 %v3439_v45  ;;  %v2592_v45 = vld [vmem:[#allocation2 + $0x38] sm:$0xf0] }
  0xb4   :  { %1723 = vmatpush.bf16.msrb.mxu1 %v2675_v46  ;;  %v3834_v46 = vld [vmem:[#allocation2 + $0x12c] sm:$0xf]  ;;  %v2595_v53 = vor.u32 %v3802_v42, %v2592_v45  ;;  %v3443_v42 = vor.u32 %v4014_v28, %v3440_v29  ;;  %v4328_v28 = vld [vmem:[%s4439_s2] sm:$0xf] }
  0xb5   :  { %1736 = vmatpush.bf16.msrb.mxu2 %v2803_v47  ;;  %v2720_v47 = vld [vmem:[#allocation2 + $0x138] sm:$0xf0]  ;;  %v3978_v45 = vld [vmem:[#allocation2 + $0x5ac] sm:$0xf] }
  0xb6   :  { %1749 = vmatpush.bf16.msrb.mxu3 %v2931_v51  ;;  %v3342_v51 = vld [vmem:[#allocation2 + $0x608] sm:$0xf]  ;;  %v2723_v54 = vor.u32 %v3834_v46, %v2720_v47  ;;  %v3296_v46 = vld [vmem:[#allocation2 + $0x5b8] sm:$0xf0]  ;;  %v4010_v47 = vld [vmem:[#allocation2 + $0x6ac] sm:$0xf] }
  0xb7   :  { %1711 = vmatpush.bf16.msrb.mxu0 %v3423_v57  ;;  %v4305_v34 = vpop.f32.mrf.mxu0  ;;  %v3830_v57 = vld [vmem:[#allocation2 + $0x10c] sm:$0xf]  ;;  %v3343_v3 = vor.u32 %v3992_v52, %v3342_v51  ;;  %v3299_v51 = vor.u32 %v3978_v45, %v3296_v46  ;;  %v3232_v45 = vld [vmem:[#allocation2 + $0x538] sm:$0xf0] }
  0xb8   :  { %1724 = vmatpush.bf16.msrb.mxu1 %v2659_v58  ;;  %v4307_v43 = vpop.f32.mrf.mxu1  ;;  %v4309_v58 = vpop.f32.mrf.mxu2  ;;  %v2707_v9 = vor.u32 %v3830_v57, %v2704_v60  ;;  %v3910_v52 = vld [vmem:[#allocation2 + $0x38c] sm:$0xf]  ;;  %v3408_v60 = vld [vmem:[#allocation2 + $0x698] sm:$0xf0] }
  0xb9   :  { %1737 = vmatpush.bf16.msrb.mxu2 %v2787_v59  ;;  %v2851_v59 = vor.u32 %v3866_v48, %v2848_v49  ;;  %v3424_v48 = vld [vmem:[#allocation2 + $0x6b8] sm:$0xf0]  ;;  %v3974_v57 = vld [vmem:[#allocation2 + $0x58c] sm:$0xf] }
  0xba   :  { %1750 = vmatpush.bf16.msrb.mxu3 %v2915_v63  ;;  %v4311_v63 = vpop.f32.mrf.mxu3  ;;  %v3427_v55 = vor.u32 %v4010_v47, %v3424_v48  ;;  %v3994_v46 = vld [vmem:[#allocation2 + $0x62c] sm:$0xf]  ;;  %v3360_v47 = vld [vmem:[#allocation2 + $0x638] sm:$0xf0]  ;;  %v296_v48 = vperm.slane %v4328_v28, 0 }
  0xbb   :  { %1712 = vmatpush.bf16.msrb.mxu0 %v3407_v5  ;;  %v3986_v5 = vld [vmem:[#allocation2 + $0x5ec] sm:$0xf] }
  0xbc   :  { %1725 = vmatpush.bf16.msrb.mxu1 %v2643_v6  ;;  %v3328_v6 = vld [vmem:[#allocation2 + $0x5f8] sm:$0xf0] }
  0xbd   :  { %1738 = vmatpush.bf16.msrb.mxu2 %v2771_v7  ;;  %v3331_v16 = vor.u32 %v3986_v5, %v3328_v6  ;;  %v3136_v5 = vld [vmem:[#allocation2 + $0x478] sm:$0xf0]  ;;  %v3970_v6 = vld [vmem:[#allocation2 + $0x56c] sm:$0xf] }
  0xbe   :  { %1751 = vmatpush.bf16.msrb.mxu3 %v2899_v11  ;;  %v3456_v11 = vld [vmem:[#allocation2 + $0x6f8] sm:$0xf0] }
  0xbf   :  { %1713 = vmatpush.bf16.msrb.mxu0 %v3391_v17  ;;  %v1460_v7 = vpop.f32.mrf.mxu0  ;;  %v3918_v17 = vld [vmem:[#allocation2 + $0x3cc] sm:$0xf]  ;;  %v3459_v24 = vor.u32 %v4018_v10, %v3456_v11  ;;  %v3011_v10 = vor.u32 %v3906_v1, %v3008_v2 }
  0xc0   :  { %1726 = vmatpush.bf16.msrb.mxu1 %v2627_v21  ;;  %v1473_v12 = vpop.f32.mrf.mxu1  ;;  %v3056_v21 = vld [vmem:[#allocation2 + $0x3d8] sm:$0xf0]  ;;  %v1486_v30 = vpop.f32.mrf.mxu2 }
  0xc1   :  { %1739 = vmatpush.bf16.msrb.mxu2 %v2755_v23  ;;  %v3950_v23 = vld [vmem:[#allocation2 + $0x4cc] sm:$0xf]  ;;  %v3059_v31 = vor.u32 %v3918_v17, %v3056_v21  ;;  %v3264_v7 = vld [vmem:[#allocation2 + $0x578] sm:$0xf0] }
  0xc2   :  { %1752 = vmatpush.bf16.msrb.mxu3 %v2883_v27  ;;  %v3312_v27 = vld [vmem:[#allocation2 + $0x5d8] sm:$0xf0]  ;;  %v1499_v32 = vpop.f32.mrf.mxu3  ;;  %v3267_v12 = vor.u32 %v3970_v6, %v3264_v7 }
  0xc3   :  { %1714 = vmatpush.bf16.msrb.mxu0 %v3375_v33  ;;  %v3187_v33 = vor.u32 %v3950_v23, %v3184_v25  ;;  %v3120_v21 = vld [vmem:[#allocation2 + $0x458] sm:$0xf0]  ;;  %v3966_v23 = vld [vmem:[#allocation2 + $0x54c] sm:$0xf] }
  0xc4   :  { %1727 = vmatpush.bf16.msrb.mxu1 %v2611_v35  ;;  %v3315_v35 = vor.u32 %v3982_v26, %v3312_v27  ;;  %v3998_v25 = vld [vmem:[#allocation2 + $0x64c] sm:$0xf]  ;;  %v3376_v26 = vld [vmem:[#allocation2 + $0x658] sm:$0xf0] }
  0xc5   :  { %1740 = vmatpush.bf16.msrb.mxu2 %v2739_v36  ;;  %v3914_v36 = vld [vmem:[#allocation2 + $0x3ac] sm:$0xf] }
  0xc6   :  { %1753 = vmatpush.bf16.msrb.mxu3 %v2867_v44  ;;  %v3168_v44 = vld [vmem:[#allocation2 + $0x4b8] sm:$0xf0]  ;;  %v3043_v49 = vor.u32 %v3914_v36, %v3040_v38  ;;  %v3930_v38 = vld [vmem:[#allocation2 + $0x42c] sm:$0xf] }
  0xc7   :  { %1715 = vmatpush.bf16.msrb.mxu0 %v3359_v50  ;;  %v3171_v50 = vor.u32 %v3946_v39, %v3168_v44  ;;  %v2976_v36 = vld [vmem:[#allocation2 + $0x338] sm:$0xf0]  ;;  %v3379_v39 = vor.u32 %v3998_v25, %v3376_v26  ;;  %v3962_v44 = vld [vmem:[#allocation2 + $0x52c] sm:$0xf]  ;;  %v4048_v25 = vld [vmem:[#allocation5 + $0xd4] sm:$0xf0] }
  0xc8   :  { %1728 = vmatpush.bf16.msrb.mxu1 %v2595_v53  ;;  %v3024_v53 = vld [vmem:[#allocation2 + $0x398] sm:$0xf0] }
  0xc9   :  { %1741 = vmatpush.bf16.msrb.mxu2 %v2723_v54  ;;  %v3942_v54 = vld [vmem:[#allocation2 + $0x48c] sm:$0xf] }
  0xca   :  { %1754 = vmatpush.bf16.msrb.mxu3 %v2851_v59  ;;  %v4006_v59 = vld [vmem:[#allocation2 + $0x68c] sm:$0xf] }
  0xcb   :  { %1716 = vmatpush.bf16.msrb.mxu0 %v3343_v3  ;;  %v4317_v61 = vpop.f32.mrf.mxu0  ;;  %v3938_v3 = vld [vmem:[#allocation2 + $0x46c] sm:$0xf]  ;;  %v3411_v4 = vor.u32 %v4006_v59, %v3408_v60  ;;  %v3216_v59 = vld [vmem:[#allocation2 + $0x518] sm:$0xf0] }
  0xcc   :  { %1729 = vmatpush.bf16.msrb.mxu1 %v2579_v8  ;;  %v4319_v62 = vpop.f32.mrf.mxu1  ;;  %v4002_v8 = vld [vmem:[#allocation2 + $0x66c] sm:$0xf]  ;;  %v3139_v11 = vor.u32 %v3938_v3, %v3136_v5  ;;  %v3582_v3 = vld [vmem:[#allocation5 + $0xf0] sm:$0xf] }
  0xcd   :  { %1742 = vmatpush.bf16.msrb.mxu2 %v2707_v9  ;;  %v3392_v9 = vld [vmem:[#allocation2 + $0x678] sm:$0xf0]  ;;  %v3990_v60 = vld [vmem:[#allocation2 + $0x60c] sm:$0xf] }
  0xce   :  { %1755 = vmatpush.bf16.msrb.mxu3 %v2835_v13  ;;  %1717 = vmatmul.bf16.vlgmr.msrb.gmra.mxu0 %v4283_v37  ;;  %v3902_v13 = vld [vmem:[#allocation2 + $0x34c] sm:$0xf]  ;;  %v3395_v17 = vor.u32 %v4002_v8, %v3392_v9  ;;  %v1459_v9 = vadd.f32 %v4305_v34, %v296_v48  ;;  %v3566_v34 = vld [vmem:[#allocation5 + $0xd0] sm:$0xf] }
  0xcf   :  { %1761 = vmatpush.bf16.msra.mxu0 %v3075_v14  ;;  %1730 = vmatmul.bf16.vlgmr.msrb.gmra.mxu1 %v4267_v19  ;;  %v3155_v19 = vor.u32 %v3942_v54, %v3152_v56  ;;  %v2992_v14 = vld [vmem:[#allocation2 + $0x358] sm:$0xf0]  ;;  %v3926_v54 = vld [vmem:[#allocation2 + $0x40c] sm:$0xf] }
  0xd0   :  { %1774 = vmatpush.bf16.msra.mxu1 %v3203_v15  ;;  %1743 = vmatmul.bf16.vlgmr.msrb.gmra.mxu2 %v4271_v22  ;;  %v3280_v22 = vld [vmem:[#allocation2 + $0x598] sm:$0xf0]  ;;  %v3934_v15 = vld [vmem:[#allocation2 + $0x44c] sm:$0xf]  ;;  %v2995_v29 = vor.u32 %v3902_v13, %v2992_v14  ;;  %v3574_v13 = vld [vmem:[#allocation5 + $0xe0] sm:$0xf] }
  0xd1   :  { %1787 = vmatpush.bf16.msra.mxu2 %v3331_v16  ;;  %1756 = vmatmul.bf16.vlgmr.msrb.gmra.mxu3 %v4265_v18  ;;  %v3027_v18 = vor.u32 %v3910_v52, %v3024_v53  ;;  %v3283_v0 = vor.u32 %v3974_v57, %v3280_v22  ;;  %v3123_v32 = vor.u32 %v3934_v15, %v3120_v21  ;;  %v2960_v53 = vld [vmem:[#allocation2 + $0x318] sm:$0xf0]  ;;  %v3958_v22 = vld [vmem:[#allocation2 + $0x50c] sm:$0xf]  ;;  %v4050_v14 = vld [vmem:[#allocation5 + $0xe4] sm:$0xf0] }
  0xd2   :  { %1800 = vmatpush.bf16.msra.mxu3 %v3459_v24  ;;  %v3248_v24 = vld [vmem:[#allocation2 + $0x558] sm:$0xf0]  ;;  %v3235_v52 = vor.u32 %v3962_v44, %v3232_v45  ;;  %v3363_v57 = vor.u32 %v3994_v46, %v3360_v47  ;;  %v3219_v6 = vor.u32 %v3958_v22, %v3216_v59  ;;  %v3502_v21 = vld [vmem:[#allocation5 + $0x50] sm:$0xf]  ;;  %v3478_v45 = vld [vmem:[#allocation5 + $0x20] sm:$0xf] }
  0xd3   :  { %1762 = vmatpush.bf16.msra.mxu0 %v3059_v31  ;;  %v4321_v16 = vpop.f32.mrf.mxu2  ;;  %v1512_v30 = vpop.f32.mrf.mxu0  ;;  %v4026_v46 = vld [vmem:[#allocation5 + $0x24] sm:$0xf0]  ;;  %v3534_v22 = vld [vmem:[#allocation5 + $0x90] sm:$0xf]  ;;  %v4040_v59 = vld [vmem:[#allocation5 + $0x94] sm:$0xf0] }
  0xd4   :  { %1775 = vmatpush.bf16.msra.mxu1 %v3187_v33  ;;  %v4323_v27 = vpop.f32.mrf.mxu3  ;;  %v1525_v31 = vpop.f32.mrf.mxu1  ;;  %v3251_v33 = vor.u32 %v3966_v23, %v3248_v24  ;;  %v4032_v23 = vld [vmem:[#allocation5 + $0x54] sm:$0xf0]  ;;  %v3575_v24 = vor.u32 %v4050_v14, %v3574_v13  ;;  %v4030_v30 = vld [vmem:[#allocation5 + $0x44] sm:$0xf0]  ;;  %v3512_v14 = vld [vmem:[#allocation5 + $0x68] sm:$0xf0] }
  0xd5   :  { %1788 = vmatpush.bf16.msra.mxu2 %v3315_v35  ;;  %v3898_v35 = vld [vmem:[#allocation2 + $0x32c] sm:$0xf]  ;;  %v3503_v26 = vor.u32 %v4032_v23, %v3502_v21  ;;  %v3558_v31 = vld [vmem:[#allocation5 + $0xc0] sm:$0xf]  ;;  %v3646_v23 = vld [vmem:[#allocation5 + $0x170] sm:$0xf] }
  0xd6   :  { %1801 = vmatpush.bf16.msra.mxu3 %v3443_v42  ;;  %v3104_v42 = vld [vmem:[#allocation2 + $0x438] sm:$0xf0]  ;;  %v3576_v21 = vld [vmem:[#allocation5 + $0xe8] sm:$0xf0] }
  0xd7   :  { %1763 = vmatpush.bf16.msra.mxu0 %v3043_v49  ;;  %v2979_v49 = vor.u32 %v3898_v35, %v2976_v36  ;;  %v4028_v36 = vld [vmem:[#allocation5 + $0x34] sm:$0xf0] }
  0xd8   :  { %1776 = vmatpush.bf16.msra.mxu1 %v3171_v50  ;;  %v3894_v50 = vld [vmem:[#allocation2 + $0x30c] sm:$0xf] }
  0xd9   :  { %1789 = vmatpush.bf16.msra.mxu2 %v3299_v51  ;;  %v3107_v51 = vor.u32 %v3930_v38, %v3104_v42  ;;  %v2963_v2 = vor.u32 %v3894_v50, %v2960_v53  ;;  %v4044_v42 = vld [vmem:[#allocation5 + $0xb4] sm:$0xf0]  ;;  %v4042_v50 = vld [vmem:[#allocation5 + $0xa4] sm:$0xf0] }
  0xda   :  { %1802 = vmatpush.bf16.msra.mxu3 %v3427_v55  ;;  %v3088_v55 = vld [vmem:[#allocation2 + $0x418] sm:$0xf0] }
  0xdb   :  { %1764 = vmatpush.bf16.msra.mxu0 %v3027_v18  ;;  %v1538_v56 = vpop.f32.mrf.mxu2  ;;  %v3344_v18 = vld [vmem:[#allocation2 + $0x618] sm:$0xf0]  ;;  %v3091_v5 = vor.u32 %v3926_v54, %v3088_v55  ;;  %v3470_v55 = vld [vmem:[#allocation5 + $0x10] sm:$0xf] }
  0xdc   :  { %1777 = vmatpush.bf16.msra.mxu1 %v3155_v19  ;;  %v3518_v19 = vld [vmem:[#allocation5 + $0x70] sm:$0xf]  ;;  %v1551_v1 = vpop.f32.mrf.mxu3  ;;  %v3347_v7 = vor.u32 %v3990_v60, %v3344_v18 }
  0xdd   :  { %1790 = vmatpush.bf16.msra.mxu2 %v3283_v0  ;;  %v4036_v0 = vld [vmem:[#allocation5 + $0x74] sm:$0xf0]  ;;  %v4022_v1 = vld [vmem:[#allocation5 + $0x4] sm:$0xf0] }
  0xde   :  { %1803 = vmatpush.bf16.msra.mxu3 %v3411_v4  ;;  %v4052_v4 = vld [vmem:[#allocation5 + $0xf4] sm:$0xf0]  ;;  %v3519_v8 = vor.u32 %v4036_v0, %v3518_v19  ;;  %v3462_v0 = vld [vmem:[#allocation5] sm:$0xf] }
  0xdf   :  { %1765 = vmatpush.bf16.msra.mxu0 %v3011_v10  ;;  %v3510_v10 = vld [vmem:[#allocation5 + $0x60] sm:$0xf] }
  0xe0   :  { %1778 = vmatpush.bf16.msra.mxu1 %v3139_v11  ;;  %v4034_v11 = vld [vmem:[#allocation5 + $0x64] sm:$0xf0] }
  0xe1   :  { %1791 = vmatpush.bf16.msra.mxu2 %v3267_v12  ;;  %v3583_v12 = vor.u32 %v4052_v4, %v3582_v3  ;;  %v3511_v15 = vor.u32 %v4034_v11, %v3510_v10  ;;  %v4035_v3 = vld [vmem:[#allocation5 + $0x74] sm:$0xf]  ;;  %v3463_v11 = vor.u32 %v4022_v1, %v3462_v0  ;;  %v3480_v1 = vld [vmem:[#allocation5 + $0x28] sm:$0xf0] }
  0xe2   :  { %1804 = vmatpush.bf16.msra.mxu3 %v3395_v17  ;;  %v1472_v17 = vadd.f32 %v4307_v43, %v1459_v9  ;;  %v3494_v43 = vld [vmem:[#allocation5 + $0x40] sm:$0xf]  ;;  %v3584_v9 = vld [vmem:[#allocation5 + $0xf8] sm:$0xf0] }
  0xe3   :  { %1766 = vmatpush.bf16.msra.mxu0 %v2995_v29 }
  0xe4   :  { %1779 = vmatpush.bf16.msra.mxu1 %v3123_v32  ;;  %v1485_v29 = vadd.f32 %v4309_v58, %v1472_v17  ;;  %v4046_v32 = vld [vmem:[#allocation5 + $0xc4] sm:$0xf0]  ;;  %v4049_v17 = vld [vmem:[#allocation5 + $0xe4] sm:$0xf] }
  0xe5   :  { %1792 = vmatpush.bf16.msra.mxu2 %v3251_v33  ;;  %v3495_v33 = vor.u32 %v4030_v30, %v3494_v43  ;;  %v3559_v38 = vor.u32 %v4046_v32, %v3558_v31  ;;  %v3638_v43 = vld [vmem:[#allocation5 + $0x160] sm:$0xf]  ;;  %v4066_v30 = vld [vmem:[#allocation5 + $0x164] sm:$0xf0]  ;;  %v3504_v31 = vld [vmem:[#allocation5 + $0x58] sm:$0xf0]  ;;  %v3579_v32 = vor.u32 %v4049_v17, %v3576_v21 }
  0xe6   :  { %1805 = vmatpush.bf16.msra.mxu3 %v3379_v39  ;;  %v3550_v39 = vld [vmem:[#allocation5 + $0xb0] sm:$0xf]  ;;  %v4056_v17 = vld [vmem:[#allocation5 + $0x114] sm:$0xf0]  ;;  %v4039_v21 = vld [vmem:[#allocation5 + $0x94] sm:$0xf] }
  0xe7   :  { %1767 = vmatpush.bf16.msra.mxu0 %v2979_v49  ;;  %v3551_v47 = vor.u32 %v4044_v42, %v3550_v39  ;;  %v4029_v39 = vld [vmem:[#allocation5 + $0x44] sm:$0xf]  ;;  %v3496_v42 = vld [vmem:[#allocation5 + $0x48] sm:$0xf0] }
  0xe8   :  { %1780 = vmatpush.bf16.msra.mxu1 %v3107_v51  ;;  %v297_v51 = vperm.slane %v4328_v28, 1 }
  0xe9   :  { %1793 = vmatpush.bf16.msra.mxu2 %v3235_v52  ;;  %v3479_v52 = vor.u32 %v4026_v46, %v3478_v45  ;;  %v3560_v46 = vld [vmem:[#allocation5 + $0xc8] sm:$0xf0] }
  0xea   :  { %1806 = vmatpush.bf16.msra.mxu3 %v3363_v57  ;;  %v1550_v60 = vadd.f32 %v4323_v27, %v297_v51 }
  0xeb   :  { %1768 = vmatpush.bf16.msra.mxu0 %v2963_v2  ;;  %v1562_v35 = vpop.f32.mrf.mxu0  ;;  %v3535_v2 = vor.u32 %v4040_v59, %v3534_v22  ;;  %v4060_v22 = vld [vmem:[#allocation5 + $0x134] sm:$0xf0] }
  0xec   :  { %1781 = vmatpush.bf16.msra.mxu1 %v3091_v5  ;;  %v3526_v5 = vld [vmem:[#allocation5 + $0x80] sm:$0xf]  ;;  %v1563_v10 = vadd.f32 %v1562_v35, %v1550_v60  ;;  %v3639_v35 = vor.u32 %v4066_v30, %v3638_v43  ;;  %v4043_v60 = vld [vmem:[#allocation5 + $0xb4] sm:$0xf]  ;;  %v4037_v30 = vld [vmem:[#allocation5 + $0x84] sm:$0xf] }
  0xed   :  { %1794 = vmatpush.bf16.msra.mxu2 %v3219_v6  ;;  %v4038_v6 = vld [vmem:[#allocation5 + $0x84] sm:$0xf0] }
  0xee   :  { %1807 = vmatpush.bf16.msra.mxu3 %v3347_v7  ;;  %1769 = vmatmul.bf16.vlgmr.msra.gmra.mxu0 %v4269_v20  ;;  %v3567_v20 = vor.u32 %v4048_v25, %v3566_v34  ;;  %v3527_v13 = vor.u32 %v4038_v6, %v3526_v5  ;;  %v4041_v6 = vld [vmem:[#allocation5 + $0xa4] sm:$0xf] }
  0xef   :  { %2211 = vmatpush.bf16.msrb.mxu0 %v3519_v8  ;;  %1782 = vmatmul.bf16.vlgmr.msra.gmra.mxu1 %v4285_v40  ;;  %v1498_v40 = vadd.f32 %v4311_v63, %v1485_v29  ;;  %v3542_v63 = vld [vmem:[#allocation5 + $0xa0] sm:$0xf]  ;;  %v4051_v8 = vld [vmem:[#allocation5 + $0xf4] sm:$0xf] }
  0xf0   :  { %2224 = vmatpush.bf16.msrb.mxu1 %v3583_v12  ;;  %1795 = vmatmul.bf16.vlgmr.msra.gmra.mxu2 %v4287_v41  ;;  %v3486_v41 = vld [vmem:[#allocation5 + $0x30] sm:$0xf]  ;;  %v3543_v56 = vor.u32 %v4042_v50, %v3542_v63  ;;  %v4062_v63 = vld [vmem:[#allocation5 + $0x144] sm:$0xf0] }
  0xf1   :  { %1808 = vmatmul.bf16.vlgmr.msra.gmra.mxu3 %v4283_v37  ;;  %v1575_v37 = vpop.f32.mrf.mxu1  ;;  %v3487_v58 = vor.u32 %v4028_v36, %v3486_v41  ;;  %v1511_v44 = vadd.f32 %v4317_v61, %v1498_v40  ;;  %v4024_v61 = vld [vmem:[#allocation5 + $0x14] sm:$0xf0]  ;;  %v3568_v40 = vld [vmem:[#allocation5 + $0xd8] sm:$0xf0]  ;;  %v3630_v41 = vld [vmem:[#allocation5 + $0x150] sm:$0xf] }
  0xf2   :  { %v3471_v18 = vor.u32 %v4024_v61, %v3470_v55  ;;  %v1576_v34 = vadd.f32 %v1575_v37, %v1563_v10  ;;  %v4064_v36 = vld [vmem:[#allocation5 + $0x154] sm:$0xf0]  ;;  %v3488_v55 = vld [vmem:[#allocation5 + $0x38] sm:$0xf0] }
  0xf3   :  { %2212 = vmatpush.bf16.msrb.mxu0 %v3511_v15  ;;  %v4340_v48 = vpop.f32.mrf.mxu2  ;;  %v1564_v53 = vpop.f32.mrf.mxu0  ;;  %v1524_v54 = vadd.f32 %v4319_v62, %v1511_v44  ;;  %v3520_v62 = vld [vmem:[#allocation5 + $0x78] sm:$0xf0]  ;;  %v3587_v15 = vor.u32 %v4051_v8, %v3584_v9  ;;  %v4045_v44 = vld [vmem:[#allocation5 + $0xc4] sm:$0xf]  ;;  %v3631_v45 = vor.u32 %v4064_v36, %v3630_v41 }
  0xf4   :  { %2225 = vmatpush.bf16.msrb.mxu1 %v3575_v24  ;;  %v4342_v49 = vpop.f32.mrf.mxu3  ;;  %v3523_v12 = vor.u32 %v4035_v3, %v3520_v62  ;;  %v4068_v24 = vld [vmem:[#allocation5 + $0x174] sm:$0xf0]  ;;  %v3563_v61 = vor.u32 %v4045_v44, %v3560_v46  ;;  %v4058_v62 = vld [vmem:[#allocation5 + $0x124] sm:$0xf0] }
  0xf5   :  { %v1537_v19 = vadd.f32 %v4321_v16, %v1524_v54  ;;  %v4033_v16 = vld [vmem:[#allocation5 + $0x64] sm:$0xf]  ;;  %v3647_v25 = vor.u32 %v4068_v24, %v3646_v23  ;;  %v3536_v23 = vld [vmem:[#allocation5 + $0x98] sm:$0xf0]  ;;  %v4084_v46 = vld [vmem:[#allocation5 + $0x1f4] sm:$0xf0] }
  0xf6   :  { %v3515_v29 = vor.u32 %v4033_v16, %v3512_v14  ;;  %v3539_v43 = vor.u32 %v4039_v21, %v3536_v23  ;;  %v3670_v21 = vld [vmem:[#allocation5 + $0x1a0] sm:$0xf]  ;;  %v4074_v23 = vld [vmem:[#allocation5 + $0x1a4] sm:$0xf0] }
  0xf7   :  { %2213 = vmatpush.bf16.msrb.mxu0 %v3503_v26  ;;  %v1813_v27 = vmax.f32 %v1537_v19, 0.0  ;;  %2237 = vmatpush.bf16.msrb.mxu2 %v3647_v25  ;;  %v3464_v25 = vld [vmem:[#allocation5 + $0x8] sm:$0xf0] }
  0xf8   :  { %2226 = vmatpush.bf16.msrb.mxu1 %v3567_v20  ;;  %v4031_v20 = vld [vmem:[#allocation5 + $0x54] sm:$0xf] }
  0xf9   :  { %v1577_v57 = vpop.f32.mrf.mxu1  ;;  %v4348_v26 = vpack.c.bf16 %v1813_v27, %v1813_v27  ;;  %v3507_v37 = vor.u32 %v4031_v20, %v3504_v31  ;;  %v4023_v27 = vld [vmem:[#allocation5 + $0x14] sm:$0xf]  ;;  %v3590_v20 = vld [vmem:[#allocation5 + $0x100] sm:$0xf]  ;;  %v4054_v31 = vld [vmem:[#allocation5 + $0x104] sm:$0xf0] }
  0xfa   :  { %v3614_v57 = vld [vmem:[#allocation5 + $0x130] sm:$0xf] }
  0xfb   :  { %2214 = vmatpush.bf16.msrb.mxu0 %v3495_v33  ;;  %v1590_v4 = vpop.f32.mrf.mxu2  ;;  %v4047_v33 = vld [vmem:[#allocation5 + $0xd4] sm:$0xf]  ;;  %2238 = vmatpush.bf16.msrb.mxu2 %v3639_v35 }
  0xfc   :  { %2227 = vmatpush.bf16.msrb.mxu1 %v3559_v38  ;;  %v1603_v7 = vpop.f32.mrf.mxu3  ;;  %v1589_v38 = vadd.f32 %v4340_v48, %v1576_v34  ;;  %v4027_v48 = vld [vmem:[#allocation5 + $0x34] sm:$0xf]  ;;  %v3606_v4 = vld [vmem:[#allocation5 + $0x120] sm:$0xf]  ;;  %v4021_v34 = vld [vmem:[#allocation5 + $0x4] sm:$0xf] }
  0xfd   :  { %v3491_v19 = vor.u32 %v4027_v48, %v3488_v55  ;;  %v3544_v7 = vld [vmem:[#allocation5 + $0xa8] sm:$0xf0]  ;;  %v3607_v16 = vor.u32 %v4058_v62, %v3606_v4  ;;  %v4067_v35 = vld [vmem:[#allocation5 + $0x174] sm:$0xf]  ;;  %v3467_v41 = vor.u32 %v4021_v34, %v3464_v25  ;;  %v4061_v48 = vld [vmem:[#allocation5 + $0x144] sm:$0xf] }
  0xfe   :  { %v1602_v50 = vadd.f32 %v4342_v49, %v1589_v38  ;;  %v4025_v49 = vld [vmem:[#allocation5 + $0x24] sm:$0xf]  ;;  %v3547_v14 = vor.u32 %v4041_v6, %v3544_v7  ;;  %v3591_v38 = vor.u32 %v4054_v31, %v3590_v20  ;;  %v3608_v62 = vld [vmem:[#allocation5 + $0x128] sm:$0xf0]  ;;  %v3662_v31 = vld [vmem:[#allocation5 + $0x190] sm:$0xf] }
  0xff   :  { %2215 = vmatpush.bf16.msrb.mxu0 %v3487_v58  ;;  %v3571_v58 = vor.u32 %v4047_v33, %v3568_v40  ;;  %2239 = vmatpush.bf16.msrb.mxu2 %v3631_v45  ;;  %v3483_v9 = vor.u32 %v4025_v49, %v3480_v1  ;;  %v3648_v40 = vld [vmem:[#allocation5 + $0x178] sm:$0xf0]  ;;  %v3710_v45 = vld [vmem:[#allocation5 + $0x1f0] sm:$0xf]  ;;  %v3686_v49 = vld [vmem:[#allocation5 + $0x1c0] sm:$0xf] }
 0x100   :  { %2228 = vmatpush.bf16.msrb.mxu1 %v3551_v47  ;;  %v3622_v47 = vld [vmem:[#allocation5 + $0x140] sm:$0xf]  ;;  %v4057_v4 = vld [vmem:[#allocation5 + $0x124] sm:$0xf]  ;;  %v3592_v25 = vld [vmem:[#allocation5 + $0x108] sm:$0xf0] }
 0x101   :  { %v4053_v34 = vld [vmem:[#allocation5 + $0x104] sm:$0xf] }
 0x103   :  { %2216 = vmatpush.bf16.msrb.mxu0 %v3479_v52  ;;  %v3499_v52 = vor.u32 %v4029_v39, %v3496_v42  ;;  %v3651_v39 = vor.u32 %v4067_v35, %v3648_v40  ;;  %v4065_v42 = vld [vmem:[#allocation5 + $0x164] sm:$0xf]  ;;  %v4070_v35 = vld [vmem:[#allocation5 + $0x184] sm:$0xf0] }
 0x104   :  { %2229 = vmatpush.bf16.msrb.mxu1 %v3543_v56  ;;  %v3623_v56 = vor.u32 %v4062_v63, %v3622_v47  ;;  %v4063_v47 = vld [vmem:[#allocation5 + $0x154] sm:$0xf]  ;;  %v3711_v63 = vor.u32 %v4084_v46, %v3710_v45 }
 0x106   :  { %2240 = vmatpush.bf16.msrb.mxu2 %v3623_v56  ;;  %2250 = vmatpush.bf16.msrb.mxu3 %v3711_v63  ;;  %v3624_v56 = vld [vmem:[#allocation5 + $0x148] sm:$0xf0] }
 0x107   :  { %2217 = vmatpush.bf16.msrb.mxu0 %v3471_v18  ;;  %v3552_v18 = vld [vmem:[#allocation5 + $0xb8] sm:$0xf0] }
 0x108   :  { %2230 = vmatpush.bf16.msrb.mxu1 %v3535_v2  ;;  %v3615_v2 = vor.u32 %v4060_v22, %v3614_v57  ;;  %v3555_v3 = vor.u32 %v4043_v60, %v3552_v18  ;;  %v3627_v57 = vor.u32 %v4061_v48, %v3624_v56  ;;  %v3694_v22 = vld [vmem:[#allocation5 + $0x1d0] sm:$0xf]  ;;  %v4059_v60 = vld [vmem:[#allocation5 + $0x134] sm:$0xf]  ;;  %v3688_v56 = vld [vmem:[#allocation5 + $0x1c8] sm:$0xf0] }
 0x10a   :  { %2241 = vmatpush.bf16.msrb.mxu2 %v3615_v2 }
 0x10b   :  { %2218 = vmatpush.bf16.msrb.mxu0 %v3463_v11  ;;  %v1614_v51 = vpop.f32.mrf.mxu0 }
 0x10c   :  { %2231 = vmatpush.bf16.msrb.mxu1 %v3527_v13  ;;  %v1615_v53 = vadd.f32 %v1614_v51, %v1602_v50  ;;  %v1627_v54 = vpop.f32.mrf.mxu1  ;;  %v3632_v50 = vld [vmem:[#allocation5 + $0x158] sm:$0xf0] }
 0x10d   :  { %v3635_v51 = vor.u32 %v4063_v47, %v3632_v50  ;;  %v4079_v50 = vld [vmem:[#allocation5 + $0x1d4] sm:$0xf] }
 0x10e   :  { %2219 = vmatmul.bf16.vlgmr.msrb.gmra.mxu0 %v4348_v26  ;;  %v1628_v59 = vadd.f32 %v1627_v54, %v1615_v53  ;;  %2242 = vmatpush.bf16.msrb.mxu2 %v3607_v16  ;;  %v3702_v53 = vld [vmem:[#allocation5 + $0x1e0] sm:$0xf]  ;;  %v4082_v54 = vld [vmem:[#allocation5 + $0x1e4] sm:$0xf0]  ;;  %v3600_v16 = vld [vmem:[#allocation5 + $0x118] sm:$0xf0] }
 0x10f   :  { %2263 = vmatpush.bf16.msra.mxu0 %v3523_v12  ;;  %v3472_v12 = vld [vmem:[#allocation5 + $0x18] sm:$0xf0] }
 0x110   :  { %2276 = vmatpush.bf16.msra.mxu1 %v3587_v15  ;;  %v1814_v0 = vmax.f32 %v1628_v59, 0.0  ;;  %v3598_v15 = vld [vmem:[#allocation5 + $0x110] sm:$0xf]  ;;  %v3475_v24 = vor.u32 %v4023_v27, %v3472_v12  ;;  %v4080_v59 = vld [vmem:[#allocation5 + $0x1d4] sm:$0xf0] }
 0x111   :  { %v4076_v27 = vld [vmem:[#allocation5 + $0x1b4] sm:$0xf0] }
 0x112   :  { %v1818_v5 = vpack.c.bf16 %v1814_v0, %v1814_v0  ;;  %v3616_v0 = vld [vmem:[#allocation5 + $0x138] sm:$0xf0] }
 0x113   :  { %2264 = vmatpush.bf16.msra.mxu0 %v3515_v29  ;;  %v4353_v8 = vpop.f32.mrf.mxu2  ;;  %v1616_v11 = vpop.f32.mrf.mxu0  ;;  %v3599_v29 = vor.u32 %v4056_v17, %v3598_v15  ;;  %v3619_v2 = vor.u32 %v4059_v60, %v3616_v0 }
 0x114   :  { %2277 = vmatpush.bf16.msra.mxu1 %v3579_v32  ;;  %v4355_v10 = vpop.f32.mrf.mxu3  ;;  %v1629_v13 = vpop.f32.mrf.mxu1  ;;  %v3528_v32 = vld [vmem:[#allocation5 + $0x88] sm:$0xf0]  ;;  %v3678_v11 = vld [vmem:[#allocation5 + $0x1b0] sm:$0xf] }
 0x115   :  { %2232 = vmatmul.bf16.vlgmr.msrb.gmra.mxu1 %v1818_v5  ;;  %2243 = vmatpush.bf16.msrb.mxu2 %v3599_v29  ;;  %v4055_v13 = vld [vmem:[#allocation5 + $0x114] sm:$0xf]  ;;  %v3671_v29 = vor.u32 %v4074_v23, %v3670_v21 }
 0x116   :  { %v3603_v17 = vor.u32 %v4055_v13, %v3600_v16 }
 0x117   :  { %2265 = vmatpush.bf16.msra.mxu0 %v3507_v37  ;;  %v3531_v37 = vor.u32 %v4037_v30, %v3528_v32  ;;  %v3595_v30 = vor.u32 %v4053_v34, %v3592_v25  ;;  %v4072_v32 = vld [vmem:[#allocation5 + $0x194] sm:$0xf0] }
 0x118   :  { %2278 = vmatpush.bf16.msra.mxu1 %v3571_v58  ;;  %v3640_v58 = vld [vmem:[#allocation5 + $0x168] sm:$0xf0] }
 0x119   :  { %2244 = vmatpush.bf16.msrb.mxu2 %v3591_v38  ;;  %v3643_v44 = vor.u32 %v4065_v42, %v3640_v58  ;;  %v3712_v38 = vld [vmem:[#allocation5 + $0x1f8] sm:$0xf0]  ;;  %v4081_v58 = vld [vmem:[#allocation5 + $0x1e4] sm:$0xf] }
 0x11b   :  { %2266 = vmatpush.bf16.msra.mxu0 %v3499_v52  ;;  %v1642_v33 = vpop.f32.mrf.mxu2 }
 0x11c   :  { %2279 = vmatpush.bf16.msra.mxu1 %v3563_v61  ;;  %v1655_v36 = vpop.f32.mrf.mxu3  ;;  %v3703_v61 = vor.u32 %v4082_v54, %v3702_v53  ;;  %v3654_v33 = vld [vmem:[#allocation5 + $0x180] sm:$0xf] }
 0x11d   :  { %2289 = vmatpush.bf16.msra.mxu2 %v3651_v39  ;;  %v3655_v40 = vor.u32 %v4070_v35, %v3654_v33  ;;  %v4083_v36 = vld [vmem:[#allocation5 + $0x1f4] sm:$0xf] }
 0x11e   :  { %2251 = vmatpush.bf16.msrb.mxu3 %v3703_v61  ;;  %v4077_v61 = vld [vmem:[#allocation5 + $0x1c4] sm:$0xf] }
 0x11f   :  { %2267 = vmatpush.bf16.msra.mxu0 %v3491_v19  ;;  %v3695_v19 = vor.u32 %v4080_v59, %v3694_v22  ;;  %v4075_v22 = vld [vmem:[#allocation5 + $0x1b4] sm:$0xf]  ;;  %v3680_v59 = vld [vmem:[#allocation5 + $0x1b8] sm:$0xf0] }
 0x120   :  { %2280 = vmatpush.bf16.msra.mxu1 %v3555_v3  ;;  %v4078_v3 = vld [vmem:[#allocation5 + $0x1c4] sm:$0xf0]  ;;  %v3683_v60 = vor.u32 %v4075_v22, %v3680_v59 }
 0x121   :  { %2290 = vmatpush.bf16.msra.mxu2 %v3643_v44  ;;  %v3704_v44 = vld [vmem:[#allocation5 + $0x1e8] sm:$0xf0] }
 0x122   :  { %2252 = vmatpush.bf16.msrb.mxu3 %v3695_v19  ;;  %v3707_v46 = vor.u32 %v4081_v58, %v3704_v44  ;;  %v3672_v19 = vld [vmem:[#allocation5 + $0x1a8] sm:$0xf0]  ;;  %v4092_v58 = vld [vmem:[%s4442_s5 + $0x38] sm:$0xff]  ;;  %v4091_v44 = vld [vmem:[%s4442_s5 + $0x30] sm:$0xff] }
 0x123   :  { %2268 = vmatpush.bf16.msra.mxu0 %v3483_v9  ;;  %v3611_v9 = vor.u32 %v4057_v4, %v3608_v62  ;;  %v299_v4 = vperm.slane %v4328_v28, 3  ;;  %v4094_v22 = vld [vmem:[%s4442_s5 + $0x48] sm:$0xff] }
 0x124   :  { %2281 = vmatpush.bf16.msra.mxu1 %v3547_v14  ;;  %v3679_v14 = vor.u32 %v4076_v27, %v3678_v11 }
 0x125   :  { %2291 = vmatpush.bf16.msra.mxu2 %v3635_v51  ;;  %v3696_v51 = vld [vmem:[#allocation5 + $0x1d8] sm:$0xf0] }
 0x126   :  { %v3699_v53 = vor.u32 %v4079_v50, %v3696_v51  ;;  %v4088_v50 = vld [vmem:[%s4442_s5 + $0x18] sm:$0xff]  ;;  %v4087_v51 = vld [vmem:[%s4442_s5 + $0x10] sm:$0xff] }
 0x127   :  { %2269 = vmatpush.bf16.msra.mxu0 %v3475_v24 }
 0x128   :  { %2282 = vmatpush.bf16.msra.mxu1 %v3539_v43 }
 0x129   :  { %2292 = vmatpush.bf16.msra.mxu2 %v3627_v57  ;;  %v3691_v57 = vor.u32 %v4077_v61, %v3688_v56  ;;  %v4097_v61 = vld [vmem:[%s4442_s5 + $0x60] sm:$0xff]  ;;  %v4096_v56 = vld [vmem:[%s4442_s5 + $0x58] sm:$0xff] }
 0x12b   :  { %2270 = vmatpush.bf16.msra.mxu0 %v3467_v41  ;;  %v1666_v52 = vpop.f32.mrf.mxu0 }
 0x12c   :  { %2283 = vmatpush.bf16.msra.mxu1 %v3531_v37  ;;  %v1679_v55 = vpop.f32.mrf.mxu1  ;;  %v3715_v37 = vor.u32 %v4083_v36, %v3712_v38 }
 0x12d   :  { %2293 = vmatpush.bf16.msra.mxu2 %v3619_v2  ;;  %v4071_v2 = vld [vmem:[#allocation5 + $0x194] sm:$0xf] }
 0x12e   :  { %2271 = vmatmul.bf16.vlgmr.msra.gmra.mxu0 %v4348_v26  ;;  %v298_v26 = vperm.slane %v4328_v28, 2 }
 0x12f   :  { %2284 = vmatmul.bf16.vlgmr.msra.gmra.mxu1 %v1818_v5  ;;  %v3687_v5 = vor.u32 %v4078_v3, %v3686_v49  ;;  %v3664_v3 = vld [vmem:[#allocation5 + $0x198] sm:$0xf0]  ;;  %2451 = vmatpush.bf16.msrb.mxu0 %v4092_v58 }
 0x130   :  { %v1641_v6 = vadd.f32 %v4353_v8, %v298_v26  ;;  %v3667_v62 = vor.u32 %v4071_v2, %v3664_v3 }
 0x131   :  { %2253 = vmatpush.bf16.msrb.mxu3 %v3687_v5  ;;  %2294 = vmatpush.bf16.msra.mxu2 %v3611_v9  ;;  %v4069_v5 = vld [vmem:[#allocation5 + $0x184] sm:$0xf] }
 0x132   :  { %v1654_v15 = vadd.f32 %v4355_v10, %v1641_v6  ;;  %v3663_v10 = vor.u32 %v4072_v32, %v3662_v31  ;;  %v3656_v6 = vld [vmem:[#allocation5 + $0x188] sm:$0xf0] }
 0x133   :  { %v1692_v18 = vpop.f32.mrf.mxu2  ;;  %v1668_v7 = vpop.f32.mrf.mxu0  ;;  %v3659_v9 = vor.u32 %v4069_v5, %v3656_v6  ;;  %2452 = vmatpush.bf16.msrb.mxu0 %v4091_v44 }
 0x134   :  { %v1705_v1 = vpop.f32.mrf.mxu3  ;;  %v1681_v12 = vpop.f32.mrf.mxu1  ;;  %v1667_v43 = vadd.f32 %v1666_v52, %v1654_v15 }
 0x135   :  { %2254 = vmatpush.bf16.msrb.mxu3 %v3679_v14  ;;  %2295 = vmatpush.bf16.msra.mxu2 %v3603_v17 }
 0x136   :  { %v1680_v20 = vadd.f32 %v1679_v55, %v1667_v43 }
 0x138   :  { %v1693_v41 = vadd.f32 %v1692_v18, %v1680_v20  ;;  %v4073_v18 = vld [vmem:[#allocation5 + $0x1a4] sm:$0xf] }
 0x139   :  { %2255 = vmatpush.bf16.msrb.mxu3 %v3671_v29  ;;  %2296 = vmatpush.bf16.msra.mxu2 %v3595_v30  ;;  %v1885_v30 = vld [vmem:[%s4441_s4] sm:$0x3] }
 0x13a   :  { %v1706_v39 = vadd.f32 %v1705_v1, %v1693_v41  ;;  %v3675_v1 = vor.u32 %v4073_v18, %v3672_v19  ;;  %v1887_v31 = vperm.slane %v1885_v30, 0 }
 0x13b   :  { %v1694_v24 = vpop.f32.mrf.mxu2 }
 0x13c   :  { %v1707_v8 = vpop.f32.mrf.mxu3 }
 0x13d   :  { %2256 = vmatpush.bf16.msrb.mxu3 %v3663_v10 }
 0x141   :  { %2257 = vmatpush.bf16.msrb.mxu3 %v3655_v40  ;;  %v1888_v40 = vperm.slane %v1885_v30, 1 }
 0x145   :  { %2302 = vmatpush.bf16.msra.mxu3 %v3715_v37 }
 0x149   :  { %2303 = vmatpush.bf16.msra.mxu3 %v3707_v46  ;;  %v4089_v46 = vld [vmem:[%s4442_s5 + $0x20] sm:$0xff] }
 0x14b   :  { %v1718_v42 = vpop.f32.mrf.mxu0 }
 0x14c   :  { %v1719_v45 = vadd.f32 %v1718_v42, %v1706_v39  ;;  %v1731_v47 = vpop.f32.mrf.mxu1 }
 0x14d   :  { %2304 = vmatpush.bf16.msra.mxu3 %v3699_v53  ;;  %v1732_v7 = vadd.f32 %v1731_v47, %v299_v4  ;;  %v4100_v47 = vld [vmem:[%s4442_s5 + $0x78] sm:$0xff]  ;;  %v4086_v53 = vld [vmem:[%s4442_s5 + $0x8] sm:$0xff] }
 0x14e   :  { %v1815_v63 = vmax.f32 %v1719_v45, 0.0  ;;  %v4090_v45 = vld [vmem:[%s4442_s5 + $0x28] sm:$0xff]  ;;  %2464 = vmatpush.bf16.msrb.mxu1 %v4100_v47 }
 0x14f   :  { %2453 = vmatpush.bf16.msrb.mxu0 %v4090_v45 }
 0x150   :  { %v1819_v52 = vpack.c.bf16 %v1815_v63, %v1815_v63  ;;  %v4099_v63 = vld [vmem:[%s4442_s5 + $0x70] sm:$0xff] }
 0x151   :  { %2305 = vmatpush.bf16.msra.mxu3 %v3691_v57  ;;  %v4095_v57 = vld [vmem:[%s4442_s5 + $0x50] sm:$0xff] }
 0x152   :  { %2245 = vmatmul.bf16.vlgmr.msrb.gmra.mxu2 %v1819_v52  ;;  %2465 = vmatpush.bf16.msrb.mxu1 %v4099_v63 }
 0x153   :  { %v1744_v54 = vpop.f32.mrf.mxu2  ;;  %v1720_v55 = vpop.f32.mrf.mxu0  ;;  %2454 = vmatpush.bf16.msrb.mxu0 %v4089_v46 }
 0x154   :  { %v1757_v48 = vpop.f32.mrf.mxu3  ;;  %v1733_v26 = vpop.f32.mrf.mxu1  ;;  %v1745_v11 = vadd.f32 %v1744_v54, %v1732_v7  ;;  %v4098_v54 = vld [vmem:[%s4442_s5 + $0x68] sm:$0xff]  ;;  %v4085_v55 = vld [vmem:[%s4442_s5] sm:$0xff] }
 0x155   :  { %2306 = vmatpush.bf16.msra.mxu3 %v3683_v60  ;;  %v4093_v60 = vld [vmem:[%s4442_s5 + $0x40] sm:$0xff] }
 0x156   :  { %v1758_v27 = vadd.f32 %v1757_v48, %v1745_v11  ;;  %2466 = vmatpush.bf16.msrb.mxu1 %v4098_v54  ;;  %v4103_v11 = vld [vmem:[%s4444_s7 + $0x10] sm:$0xff] }
 0x157   :  { %2455 = vmatpush.bf16.msrb.mxu0 %v4088_v50 }
 0x159   :  { %2307 = vmatpush.bf16.msra.mxu3 %v3675_v1 }
 0x15a   :  { %2467 = vmatpush.bf16.msrb.mxu1 %v4097_v61 }
 0x15b   :  { %v1746_v0 = vpop.f32.mrf.mxu2  ;;  %2456 = vmatpush.bf16.msrb.mxu0 %v4087_v51 }
 0x15c   :  { %v1759_v49 = vpop.f32.mrf.mxu3 }
 0x15d   :  { %2308 = vmatpush.bf16.msra.mxu3 %v3667_v62 }
 0x15e   :  { %2468 = vmatpush.bf16.msrb.mxu1 %v4096_v56 }
 0x15f   :  { %2457 = vmatpush.bf16.msrb.mxu0 %v4086_v53 }
 0x161   :  { %2309 = vmatpush.bf16.msra.mxu3 %v3659_v9  ;;  %v4104_v9 = vld [vmem:[%s4444_s7 + $0x18] sm:$0xff] }
 0x162   :  { %2297 = vmatmul.bf16.vlgmr.msra.gmra.mxu2 %v1819_v52  ;;  %2469 = vmatpush.bf16.msrb.mxu1 %v4095_v57 }
 0x163   :  { %2458 = vmatpush.bf16.msrb.mxu0 %v4085_v55  ;;  %2523 = vmatpush.bf16.msrb.mxu2 %v4104_v9 }
 0x166   :  { %2470 = vmatpush.bf16.msrb.mxu1 %v4094_v22 }
 0x167   :  { %2524 = vmatpush.bf16.msrb.mxu2 %v4103_v11 }
 0x16a   :  { %2471 = vmatpush.bf16.msrb.mxu1 %v4093_v60 }
 0x16b   :  { %v1770_v12 = vpop.f32.mrf.mxu0 }
 0x16c   :  { %v1783_v13 = vpop.f32.mrf.mxu1  ;;  %v1771_v16 = vadd.f32 %v1770_v12, %v1758_v27  ;;  %v4102_v27 = vld [vmem:[%s4444_s7 + $0x8] sm:$0xff]  ;;  %v4101_v12 = vld [vmem:[%s4444_s7] sm:$0xff] }
 0x16d   :  { %2525 = vmatpush.bf16.msrb.mxu2 %v4102_v27 }
 0x16e   :  { %v1784_v14 = vadd.f32 %v1783_v13, %v1771_v16 }
 0x171   :  { %2526 = vmatpush.bf16.msrb.mxu2 %v4101_v12 }
 0x173   :  { %v1796_v15 = vpop.f32.mrf.mxu2  ;;  %v1772_v23 = vpop.f32.mrf.mxu0 }
 0x174   :  { %v1797_v17 = vadd.f32 %v1796_v15, %v1784_v14  ;;  %v1809_v21 = vpop.f32.mrf.mxu3  ;;  %v1785_v28 = vpop.f32.mrf.mxu1  ;;  %v4112_v14 = vld [vmem:[%s4443_s6] ss:$0 sm:$0xff]  ;;  %s4202_s6 = smov [#allocation7]  }
 0x175   :  { %s2551_s7 = sshll.u32 %s4202_s6, 4  ;;  %s2552_s7 = int_to_ptr.vmem [resolvable:$true] %s2551_s7 }
 0x176   :  { %v1810_v24 = vadd.f32 %v1809_v21, %v1797_v17 }
 0x178   :  { %v1816_v34 = vmax.f32 %v1810_v24, 0.0 }
 0x17a   :  { %v1820_v25 = vpack.c.bf16 %v1816_v34, %v1816_v34  ;;  %v4113_v34 = vld [vmem:[%s4445_s8] ss:$0 sm:$0xff] }
 0x17b   :  { %v1798_v8 = vpop.f32.mrf.mxu2 }
 0x17c   :  { %v1811_v29 = vpop.f32.mrf.mxu3  ;;  %2258 = vmatmul.bf16.vlgmr.msrb.gmra.mxu3 %v1820_v25 }
 0x18b   :  { %v2220_v43 = vpop.f32.mrf.mxu0 }
 0x18c   :  { %2310 = vmatmul.bf16.vlgmr.msra.gmra.mxu3 %v1820_v25  ;;  %v2221_v32 = vadd.f32 %v2220_v43, %v1887_v31 }
 0x192   :  { %v2233_v33 = vpop.f32.mrf.mxu1 }
 0x193   :  { %v2222_v20 = vpop.f32.mrf.mxu0  ;;  %v2234_v10 = vadd.f32 %v2233_v33, %v2221_v32 }
 0x19a   :  { %v2235_v35 = vpop.f32.mrf.mxu1 }
 0x1ab   :  { %v2272_v41 = vpop.f32.mrf.mxu0 }
 0x1ac   :  { %v2273_v36 = vadd.f32 %v2272_v41, %v1888_v40  ;;  %v2285_v38 = vpop.f32.mrf.mxu1 }
 0x1ae   :  { %v2286_v37 = vadd.f32 %v2285_v38, %v2273_v36 }
 0x1b3   :  { %v2274_v39 = vpop.f32.mrf.mxu0 }
 0x1b4   :  { %v2287_v42 = vpop.f32.mrf.mxu1 }
 0x1d5   :  { %v2246_v52 = vpop.f32.mrf.mxu2 }
 0x1d6   :  { %v2247_v18 = vadd.f32 %v2246_v52, %v2234_v10 }
 0x1dd   :  { %v2248_v48 = vpop.f32.mrf.mxu2 }
 0x1e5   :  { %v2298_v26 = vpop.f32.mrf.mxu2 }
 0x1e6   :  { %v2299_v3 = vadd.f32 %v2298_v26, %v2286_v37 }
 0x1ed   :  { %v2300_v59 = vpop.f32.mrf.mxu2 }
 0x1ff   :  { %v2259_v19 = vpop.f32.mrf.mxu3 }
 0x200   :  { %v2260_v0 = vadd.f32 %v2259_v19, %v2247_v18 }
 0x202   :  { %v2315_v49 = vmax.f32 %v2260_v0, 0.0 }
 0x204   :  { %v2317_v1 = vpack.c.bf16 %v2315_v49, %v2315_v49 }
 0x206   :  { %2459 = vmatmul.bf16.vlgmr.msrb.gmra.mxu0 %v2317_v1 }
 0x207   :  { %v2261_v2 = vpop.f32.mrf.mxu3 }
 0x20f   :  { %v2311_v4 = vpop.f32.mrf.mxu3 }
 0x210   :  { %v2312_v62 = vadd.f32 %v2311_v4, %v2299_v3 }
 0x212   :  { %v2316_v5 = vmax.f32 %v2312_v62, 0.0 }
 0x214   :  { %v2318_v6 = vpack.c.bf16 %v2316_v5, %v2316_v5 }
 0x216   :  { %2472 = vmatmul.bf16.vlgmr.msrb.gmra.mxu1 %v2318_v6 }
 0x217   :  { %v2313_v7 = vpop.f32.mrf.mxu3 }
 0x283   :  { %v2460_v13 = vpop.f32.mrf.mxu0 }
 0x284   :  { %v2461_v15 = vadd.f32 %v4112_v14, %v2460_v13 }
 0x28b   :  { %v2462_v16 = vpop.f32.mrf.mxu0 }
 0x293   :  { %v2473_v17 = vpop.f32.mrf.mxu1 }
 0x294   :  { %v2474_v21 = vadd.f32 %v2473_v17, %v2461_v15 }
 0x296   :  { %v2477_v23 = vmax.f32 %v2474_v21, 0.0 }
 0x298   :  { %v2478_v28 = vpack.c.bf16 %v2477_v23, %v2477_v23 }
 0x29a   :  { %3796 = vmatmul.msk.bf16.vlgmr.msrb.gmra.mxu2 %vm2515_vm0, %v2478_v28 }
 0x29b   :  { %v2475_v24 = vpop.f32.mrf.mxu1 }
 0x31d   :  { %v2528_v25 = vpop.f32.mrf.mxu2 }
 0x31e   :  { %v2529_v8 = vadd.f32 %v4113_v34, %v2528_v25 }
 0x320   :  { %v2532_v29 = vmax.f32 %v2529_v8, 0.0 }
 0x322   :  { %v2534_v43 = vsel %vm2533_vm1, %v2532_v29, -inf }
 0x323   :  { %2535 = vmax.xlane.f32.xlu0 %v2534_v43 }
 0x325   :  { %v2530_v30 = vpop.f32.mrf.mxu2 }
 0x396   :  { %v2536_v20 = vpop.xlane.xlu0 %2535 }
 0x397   :  { %v2537_v31 = vsub.f32 %v2532_v29, %v2536_v20 }
 0x399   :  { %v2538_v32 = vmul.f32 1.442695, %v2537_v31 }
 0x39b   :  { %4114 = vpow2.f32 %v2538_v32 }
 0x3a1   :  { %v4115_v33 = vpop.eup %4114 }
 0x3a2   :  { %v2540_v10 = vsel %vm2533_vm1, %v4115_v33, 0.0 }
 0x3a3   :  { %2541 = vadd.xlane.f32.xlu0 %v2540_v10 }
 0x416   :  { %v2542_v35 = vpop.xlane.xlu0 %2541 }
 0x417   :  { %4116 = vrcp.f32 %v2542_v35 }
 0x41d   :  { %v4117_v40 = vpop.eup %4116 }
 0x41e   :  { %v2544_v41 = vmul.f32 %v4117_v40, %v4115_v33 }
 0x420   :  { %2545 = vst.msk [vmem:[#allocation7] sm:$0xff] %vm2533_vm1, %v2544_v41 }
 0x421   :  { %2556 = dma.vmem_to_hbm [thread:$0]  %s2552_s7, 128, %s2554_s25, [#allocation4]  }
 0x422   :  { %4194 = dma.done.wait [#allocation4], 128  }
 0x423   :  { %4195 = vsyncadd [#allocation4], 4294967168 }
 0x424   :  { %2561 = vsyncpa [#allocation3], 1 }
 0x425   :  { %2562 = vsyncpa [#allocation6], 1 }
 0x426   :  { %2563 = vsyncpa [#allocation4], 1 }

</bundles_post_ra>
